<compile_context>
chip_gen: v7x
topology: tpu7x:2x2x1
jax: 0.10.0
libtpu: 0.0.40
codegen_flags: <defaults>
</compile_context>

<pallas_src>
import time

import jax
import jax.numpy as jnp
from jax.experimental import pallas as pl
from jax.experimental.pallas import tpu as pltpu


_LANE = 128              # TPU lane width; conv output channels padded to this.
_Q_SCALE = 0.0472        # torch.quantize_per_tensor(scale=0.0472, zero_point=64)
_Q_INV_SCALE = 1.0 / _Q_SCALE
_Q_ZP = 64.0


def _round_up(n, m):
    return (n + m - 1) // m * m


def _fake_quant(x):
    """Simulate torch.quantize_per_tensor(quint8) + implicit dequant, in f32."""
    q = jnp.clip(jnp.round(x * _Q_INV_SCALE) + _Q_ZP, 0.0, 255.0)
    return (q - _Q_ZP) * _Q_SCALE


# ----------------------------------------------------------------------------
# Kernels (NHWC; channel dim on the lane axis)
# ----------------------------------------------------------------------------
def _conv3x3_kernel(x_ref, w_ref, b_ref, o_ref):
    # x_ref: (1, H+2, W+2, Cin)   halo-padded NHWC input (true channel count)
    # w_ref: (3, 3, Cin, Coutp)   bf16 weights, Cout zero-padded to 128 lanes
    # b_ref: (1, Coutp)           f32 bias (zero in the padded lanes)
    # o_ref: (1, H, W, Coutp)     lane-dense output block
    _, hp, wp, cin = x_ref.shape
    h, w = hp - 2, wp - 2
    coutp = o_ref.shape[-1]

    # Fused input fake-quant (zero halo maps to 0.0 under this quant grid),
    # then one cast to bf16 for the MXU operands.
    x = _fake_quant(x_ref[0]).astype(jnp.bfloat16)          # (H+2, W+2, Cin)

    # Nine accumulated MXU dots instead of materializing a (H*W, 9*C) patch.
    acc = jnp.zeros((h * w, coutp), jnp.float32)
    for dh in range(3):
        for dw in range(3):
            tap = x[dh:dh + h, dw:dw + w, :].reshape(h * w, cin)
            acc += jnp.dot(tap, w_ref[dh, dw],
                           preferred_element_type=jnp.float32)
    acc = acc + b_ref[...]

    # nnq.Conv2d default output quantization (scale=1.0, zero_point=0,
    # quint8); the clamp at 0 also fuses any following ReLU for free.
    o_ref[0] = jnp.clip(jnp.round(acc), 0.0, 255.0).reshape(h, w, coutp)


def _relu_kernel(x_ref, o_ref):
    # x_ref / o_ref: (1, H, W*C) lane-dense blocks (W*C == 128 at these shapes).
    o_ref[...] = jnp.maximum(_fake_quant(x_ref[...]), 0.0)


def _maxpool2x2_kernel(x_ref, o_ref):
    # x_ref: (1, Ho, 2, Wo, 2, C)  -- window axes exposed by a free reshape
    # o_ref: (1, Ho, Wo, C)
    x = _fake_quant(x_ref[0])                       # (Ho, 2, Wo, 2, C)
    m = jnp.maximum(x[:, 0], x[:, 1])               # rows: major-axis select
    o_ref[0] = jnp.maximum(m[:, :, 0], m[:, :, 1])  # cols: tiny sublane select


# ----------------------------------------------------------------------------
# Wrappers (NHWC in / NHWC out; no transposes anywhere)
# ----------------------------------------------------------------------------
def _pack_conv_params(w_oihw, bias):
    """(Cout,Cin,3,3) torch weights -> bf16 (3,3,Cin,Cout_pad) + f32 bias."""
    cout, cin, kh, kw = w_oihw.shape
    cout_p = _round_up(cout, _LANE)
    wt = jnp.transpose(w_oihw, (2, 3, 1, 0))                  # (3,3,Cin,Cout)
    wt = jnp.pad(wt, ((0, 0), (0, 0), (0, 0), (0, cout_p - cout)))
    w_packed = wt.astype(jnp.bfloat16)                        # (3,3,Cin,Coutp)
    b_packed = jnp.pad(bias, (0, cout_p - cout)).reshape(1, cout_p)
    return w_packed, b_packed


def conv3x3_nhwc(x, w_packed, b_packed):
    b, h, w, cin = x.shape
    coutp = w_packed.shape[-1]
    # Spatial halo only; channels stay at their true (tiny) count so the
    # input DMA is not inflated 16-32x by lane padding in HBM.
    xp = jnp.pad(x, ((0, 0), (1, 1), (1, 1), (0, 0)))
    out = pl.pallas_call(
        _conv3x3_kernel,
        out_shape=jax.ShapeDtypeStruct((b, h, w, coutp), jnp.float32),
        grid=(b,),
        in_specs=[
            pl.BlockSpec((1, h + 2, w + 2, cin), lambda i: (i, 0, 0, 0)),
            # Constant index_map: weights/bias stay resident across grid steps.
            pl.BlockSpec((3, 3, cin, coutp), lambda i: (0, 0, 0, 0)),
            pl.BlockSpec((1, coutp), lambda i: (0, 0)),
        ],
        out_specs=pl.BlockSpec((1, h, w, coutp), lambda i: (i, 0, 0, 0)),
        compiler_params=pltpu.CompilerParams(
            dimension_semantics=("parallel",)),
    )(xp, w_packed, b_packed)
    # Lane-dense, channel-padded output kept as-is (padded channels are 0);
    # slice [..., :cout] only at the network output if required.
    return out


def relu_nhwc(x):
    b, h, w, c = x.shape
    x2 = x.reshape(b, h, w * c)        # free reshape -> lane-dense last dim
    out = pl.pallas_call(
        _relu_kernel,
        out_shape=jax.ShapeDtypeStruct((b, h, w * c), jnp.float32),
        grid=(b,),
        in_specs=[pl.BlockSpec((1, h, w * c), lambda i: (i, 0, 0))],
        out_specs=pl.BlockSpec((1, h, w * c), lambda i: (i, 0, 0)),
        compiler_params=pltpu.CompilerParams(dimension_semantics=("parallel",)),
    )(x2)
    return out.reshape(b, h, w, c)


def maxpool2x2_nhwc(x):
    b, h, w, c = x.shape
    ho, wo = h // 2, w // 2
    # Single free (contiguous) reshape; the old even/odd strided-slice pair
    # that materialized two half tensors in HBM is gone.
    xw = x.reshape(b, ho, 2, wo, 2, c)
    out = pl.pallas_call(
        _maxpool2x2_kernel,
        out_shape=jax.ShapeDtypeStruct((b, ho, wo, c), jnp.float32),
        grid=(b,),
        in_specs=[pl.BlockSpec((1, ho, 2, wo, 2, c),
                               lambda i: (i, 0, 0, 0, 0, 0))],
        out_specs=pl.BlockSpec((1, ho, wo, c), lambda i: (i, 0, 0, 0)),
        compiler_params=pltpu.CompilerParams(dimension_semantics=("parallel",)),
    )(xw)
    return out


# ----------------------------------------------------------------------------
# VGG19 timing-harness module (scaled-down shapes)
# ----------------------------------------------------------------------------
class VGG19:
    def __init__(self, batch_size=2, spatial=16, c_in=4, c1=8, c2=16):
        s, s2 = spatial, spatial // 2
        # NCHW shape records mirroring the original module
        # (scaled: 3->c_in, 64->c1, 128->c2, 224->spatial, 112->spatial//2).
        self.x0 = [batch_size, c_in, s, s]
        self.x1 = [batch_size, c1, s, s]
        self.x2 = [batch_size, c1, s, s]
        self.x3 = [batch_size, c1, s, s]
        self.x4 = [batch_size, c1, s, s]
        self.x5 = [batch_size, c1, s2, s2]
        self.x6 = [batch_size, c2, s2, s2]
        self.x7 = [batch_size, c2, s2, s2]
        self.x8 = [batch_size, c2, s2, s2]
        self.x9 = [batch_size, c2, s2, s2]

        key = jax.random.PRNGKey(0)
        k0, k2, k5, k7, kd = jax.random.split(key, 5)

        def make_conv(k, cin, cout):
            kw_, kb_ = jax.random.split(k)
            wgt = 0.05 * jax.random.normal(kw_, (cout, cin, 3, 3), jnp.float32)
            bias = 0.05 * jax.random.normal(kb_, (cout,), jnp.float32)
            w_packed, b_packed = _pack_conv_params(wgt, bias)

            def op(x):
                return conv3x3_nhwc(x, w_packed, b_packed)

            return jax.jit(op)

        self.OP0 = make_conv(k0, c_in, c1)     # 3 -> 64   (scaled)
        self.OP2 = make_conv(k2, c1, c1)       # 64 -> 64
        self.OP5 = make_conv(k5, c1, c2)       # 64 -> 128
        self.OP7 = make_conv(k7, c2, c2)       # 128 -> 128
        relu = jax.jit(relu_nhwc)
        pool = jax.jit(maxpool2x2_nhwc)
        self.OP1 = relu
        self.OP3 = relu
        self.OP4 = pool
        self.OP6 = relu
        self.OP8 = relu
        self.OP9 = pool

        self.time = {}
        self.last_out = None
        self._data_key = kd

    def forward(self, i):
        while True:
            if hasattr(self, 'OP{}'.format(i)):
                self._data_key, sub = jax.random.split(self._data_key)
                n, c, h, w = getattr(self, 'x{}'.format(i))
                # Activations are NHWC end-to-end (channels on the lane axis);
                # the input fake-quant is fused into every kernel.
                x = jax.random.uniform(sub, (n, h, w, c), jnp.float32)
                op = getattr(self, 'OP{}'.format(i))
                for _ in range(5):                      # warm-up runs
                    jax.block_until_ready(op(x))
                start = time.time()
                out = jax.block_until_ready(op(x))
                stop = time.time()
                self.time['OP{}'.format(i)] = stop - start
                self.last_out = out
                i = i + 1
            else:
                return i


if __name__ == "__main__":
    model = VGG19(batch_size=2, spatial=16, c_in=4, c1=8, c2=16)
    final_i = model.forward(0)
    assert final_i == 10, final_i
    jax.block_until_ready(model.last_out)
    print("KERNEL_OK")
</pallas_src>

<mosaic_0001>
module attributes {stable_mosaic.version = 11 : i64} {
  func.func @_conv3x3_kernel(%arg0: i32, %arg1: memref<1x18x18x4xf32, #tpu.memory_space<vmem>>, %arg2: memref<3x3x4x128xbf16, #tpu.memory_space<vmem>>, %arg3: memref<1x128xf32, #tpu.memory_space<vmem>>, %arg4: memref<1x16x16x128xf32, #tpu.memory_space<vmem>>) attributes {dimension_semantics = [#tpu.dimension_semantics<parallel>], iteration_bounds = array<i64: 2>, scalar_prefetch = 0 : i64, scratch_operands = 0 : i64, tpu.core_type = #tpu.core_type<tc>, window_params = [{transform_indices = @transform_0, window_bounds = array<i64: 1, 18, 18, 4>}, {pipeline_mode = #tpu.pipeline_mode<synchronous>, transform_indices = @transform_1, window_bounds = array<i64: 3, 3, 4, 128>}, {pipeline_mode = #tpu.pipeline_mode<synchronous>, transform_indices = @transform_2, window_bounds = array<i64: 1, 128>}, {transform_indices = @transform_3, window_bounds = array<i64: 1, 16, 16, 128>}]} {
    %c0 = arith.constant 0 : index
    %c0_0 = arith.constant 0 : index
    %c0_1 = arith.constant 0 : index
    %c0_2 = arith.constant 0 : index
    %0 = vector.load %arg1[%c0, %c0_0, %c0_1, %c0_2] : memref<1x18x18x4xf32, #tpu.memory_space<vmem>>, vector<1x18x18x4xf32>
    %1 = vector.shape_cast %0 : vector<1x18x18x4xf32> to vector<18x18x4xf32>
    %cst = arith.constant 21.1864414 : f32
    %2 = vector.broadcast %cst : f32 to vector<18x18x4xf32>
    %3 = arith.mulf %1, %2 : vector<18x18x4xf32>
    %4 = math.roundeven %3 : vector<18x18x4xf32>
    %cst_3 = arith.constant 6.400000e+01 : f32
    %5 = vector.broadcast %cst_3 : f32 to vector<18x18x4xf32>
    %6 = arith.addf %4, %5 : vector<18x18x4xf32>
    %cst_4 = arith.constant 0.000000e+00 : f32
    %cst_5 = arith.constant 2.550000e+02 : f32
    %7 = vector.broadcast %cst_4 : f32 to vector<18x18x4xf32>
    %8 = arith.maximumf %7, %6 : vector<18x18x4xf32>
    %9 = vector.broadcast %cst_5 : f32 to vector<18x18x4xf32>
    %10 = arith.minimumf %9, %8 : vector<18x18x4xf32>
    %cst_6 = arith.constant 6.400000e+01 : f32
    %11 = vector.broadcast %cst_6 : f32 to vector<18x18x4xf32>
    %12 = arith.subf %10, %11 : vector<18x18x4xf32>
    %cst_7 = arith.constant 4.720000e-02 : f32
    %13 = vector.broadcast %cst_7 : f32 to vector<18x18x4xf32>
    %14 = arith.mulf %12, %13 : vector<18x18x4xf32>
    %15 = arith.truncf %14 : vector<18x18x4xf32> to vector<18x18x4xbf16>
    %cst_8 = arith.constant 0.000000e+00 : f32
    %16 = vector.broadcast %cst_8 : f32 to vector<256x128xf32>
    %17 = vector.extract_strided_slice %15 {offsets = [0, 0, 0], sizes = [16, 16, 4], strides = [1, 1, 1]} : vector<18x18x4xbf16> to vector<16x16x4xbf16>
    %18 = vector.shape_cast %17 : vector<16x16x4xbf16> to vector<256x4xbf16>
    %c0_9 = arith.constant 0 : index
    %c0_10 = arith.constant 0 : index
    %c0_11 = arith.constant 0 : index
    %c0_12 = arith.constant 0 : index
    %19 = vector.load %arg2[%c0_9, %c0_10, %c0_11, %c0_12] : memref<3x3x4x128xbf16, #tpu.memory_space<vmem>>, vector<1x1x4x128xbf16>
    %20 = vector.shape_cast %19 : vector<1x1x4x128xbf16> to vector<4x128xbf16>
    %cst_13 = arith.constant dense<0.000000e+00> : vector<256x128xf32>
    %21 = tpu.matmul %18, %20, %cst_13 {dimension_numbers = #tpu.dot_dimension_numbers<[1], [0], [0], [1], [0, 0, 1, 1], [], []>} : vector<256x4xbf16>, vector<4x128xbf16>, vector<256x128xf32> -> vector<256x128xf32>
    %22 = arith.addf %16, %21 : vector<256x128xf32>
    %23 = vector.extract_strided_slice %15 {offsets = [0, 1, 0], sizes = [16, 16, 4], strides = [1, 1, 1]} : vector<18x18x4xbf16> to vector<16x16x4xbf16>
    %24 = vector.shape_cast %23 : vector<16x16x4xbf16> to vector<256x4xbf16>
    %c0_14 = arith.constant 0 : index
    %c1 = arith.constant 1 : index
    %c0_15 = arith.constant 0 : index
    %c0_16 = arith.constant 0 : index
    %25 = vector.load %arg2[%c0_14, %c1, %c0_15, %c0_16] : memref<3x3x4x128xbf16, #tpu.memory_space<vmem>>, vector<1x1x4x128xbf16>
    %26 = vector.shape_cast %25 : vector<1x1x4x128xbf16> to vector<4x128xbf16>
    %cst_17 = arith.constant dense<0.000000e+00> : vector<256x128xf32>
    %27 = tpu.matmul %24, %26, %cst_17 {dimension_numbers = #tpu.dot_dimension_numbers<[1], [0], [0], [1], [0, 0, 1, 1], [], []>} : vector<256x4xbf16>, vector<4x128xbf16>, vector<256x128xf32> -> vector<256x128xf32>
    %28 = arith.addf %22, %27 : vector<256x128xf32>
    %29 = vector.extract_strided_slice %15 {offsets = [0, 2, 0], sizes = [16, 16, 4], strides = [1, 1, 1]} : vector<18x18x4xbf16> to vector<16x16x4xbf16>
    %30 = vector.shape_cast %29 : vector<16x16x4xbf16> to vector<256x4xbf16>
    %c0_18 = arith.constant 0 : index
    %c2 = arith.constant 2 : index
    %c0_19 = arith.constant 0 : index
    %c0_20 = arith.constant 0 : index
    %31 = vector.load %arg2[%c0_18, %c2, %c0_19, %c0_20] : memref<3x3x4x128xbf16, #tpu.memory_space<vmem>>, vector<1x1x4x128xbf16>
    %32 = vector.shape_cast %31 : vector<1x1x4x128xbf16> to vector<4x128xbf16>
    %cst_21 = arith.constant dense<0.000000e+00> : vector<256x128xf32>
    %33 = tpu.matmul %30, %32, %cst_21 {dimension_numbers = #tpu.dot_dimension_numbers<[1], [0], [0], [1], [0, 0, 1, 1], [], []>} : vector<256x4xbf16>, vector<4x128xbf16>, vector<256x128xf32> -> vector<256x128xf32>
    %34 = arith.addf %28, %33 : vector<256x128xf32>
    %35 = vector.extract_strided_slice %15 {offsets = [1, 0, 0], sizes = [16, 16, 4], strides = [1, 1, 1]} : vector<18x18x4xbf16> to vector<16x16x4xbf16>
    %36 = vector.shape_cast %35 : vector<16x16x4xbf16> to vector<256x4xbf16>
    %c1_22 = arith.constant 1 : index
    %c0_23 = arith.constant 0 : index
    %c0_24 = arith.constant 0 : index
    %c0_25 = arith.constant 0 : index
    %37 = vector.load %arg2[%c1_22, %c0_23, %c0_24, %c0_25] : memref<3x3x4x128xbf16, #tpu.memory_space<vmem>>, vector<1x1x4x128xbf16>
    %38 = vector.shape_cast %37 : vector<1x1x4x128xbf16> to vector<4x128xbf16>
    %cst_26 = arith.constant dense<0.000000e+00> : vector<256x128xf32>
    %39 = tpu.matmul %36, %38, %cst_26 {dimension_numbers = #tpu.dot_dimension_numbers<[1], [0], [0], [1], [0, 0, 1, 1], [], []>} : vector<256x4xbf16>, vector<4x128xbf16>, vector<256x128xf32> -> vector<256x128xf32>
    %40 = arith.addf %34, %39 : vector<256x128xf32>
    %41 = vector.extract_strided_slice %15 {offsets = [1, 1, 0], sizes = [16, 16, 4], strides = [1, 1, 1]} : vector<18x18x4xbf16> to vector<16x16x4xbf16>
    %42 = vector.shape_cast %41 : vector<16x16x4xbf16> to vector<256x4xbf16>
    %c1_27 = arith.constant 1 : index
    %c1_28 = arith.constant 1 : index
    %c0_29 = arith.constant 0 : index
    %c0_30 = arith.constant 0 : index
    %43 = vector.load %arg2[%c1_27, %c1_28, %c0_29, %c0_30] : memref<3x3x4x128xbf16, #tpu.memory_space<vmem>>, vector<1x1x4x128xbf16>
    %44 = vector.shape_cast %43 : vector<1x1x4x128xbf16> to vector<4x128xbf16>
    %cst_31 = arith.constant dense<0.000000e+00> : vector<256x128xf32>
    %45 = tpu.matmul %42, %44, %cst_31 {dimension_numbers = #tpu.dot_dimension_numbers<[1], [0], [0], [1], [0, 0, 1, 1], [], []>} : vector<256x4xbf16>, vector<4x128xbf16>, vector<256x128xf32> -> vector<256x128xf32>
    %46 = arith.addf %40, %45 : vector<256x128xf32>
    %47 = vector.extract_strided_slice %15 {offsets = [1, 2, 0], sizes = [16, 16, 4], strides = [1, 1, 1]} : vector<18x18x4xbf16> to vector<16x16x4xbf16>
    %48 = vector.shape_cast %47 : vector<16x16x4xbf16> to vector<256x4xbf16>
    %c1_32 = arith.constant 1 : index
    %c2_33 = arith.constant 2 : index
    %c0_34 = arith.constant 0 : index
    %c0_35 = arith.constant 0 : index
    %49 = vector.load %arg2[%c1_32, %c2_33, %c0_34, %c0_35] : memref<3x3x4x128xbf16, #tpu.memory_space<vmem>>, vector<1x1x4x128xbf16>
    %50 = vector.shape_cast %49 : vector<1x1x4x128xbf16> to vector<4x128xbf16>
    %cst_36 = arith.constant dense<0.000000e+00> : vector<256x128xf32>
    %51 = tpu.matmul %48, %50, %cst_36 {dimension_numbers = #tpu.dot_dimension_numbers<[1], [0], [0], [1], [0, 0, 1, 1], [], []>} : vector<256x4xbf16>, vector<4x128xbf16>, vector<256x128xf32> -> vector<256x128xf32>
    %52 = arith.addf %46, %51 : vector<256x128xf32>
    %53 = vector.extract_strided_slice %15 {offsets = [2, 0, 0], sizes = [16, 16, 4], strides = [1, 1, 1]} : vector<18x18x4xbf16> to vector<16x16x4xbf16>
    %54 = vector.shape_cast %53 : vector<16x16x4xbf16> to vector<256x4xbf16>
    %c2_37 = arith.constant 2 : index
    %c0_38 = arith.constant 0 : index
    %c0_39 = arith.constant 0 : index
    %c0_40 = arith.constant 0 : index
    %55 = vector.load %arg2[%c2_37, %c0_38, %c0_39, %c0_40] : memref<3x3x4x128xbf16, #tpu.memory_space<vmem>>, vector<1x1x4x128xbf16>
    %56 = vector.shape_cast %55 : vector<1x1x4x128xbf16> to vector<4x128xbf16>
    %cst_41 = arith.constant dense<0.000000e+00> : vector<256x128xf32>
    %57 = tpu.matmul %54, %56, %cst_41 {dimension_numbers = #tpu.dot_dimension_numbers<[1], [0], [0], [1], [0, 0, 1, 1], [], []>} : vector<256x4xbf16>, vector<4x128xbf16>, vector<256x128xf32> -> vector<256x128xf32>
    %58 = arith.addf %52, %57 : vector<256x128xf32>
    %59 = vector.extract_strided_slice %15 {offsets = [2, 1, 0], sizes = [16, 16, 4], strides = [1, 1, 1]} : vector<18x18x4xbf16> to vector<16x16x4xbf16>
    %60 = vector.shape_cast %59 : vector<16x16x4xbf16> to vector<256x4xbf16>
    %c2_42 = arith.constant 2 : index
    %c1_43 = arith.constant 1 : index
    %c0_44 = arith.constant 0 : index
    %c0_45 = arith.constant 0 : index
    %61 = vector.load %arg2[%c2_42, %c1_43, %c0_44, %c0_45] : memref<3x3x4x128xbf16, #tpu.memory_space<vmem>>, vector<1x1x4x128xbf16>
    %62 = vector.shape_cast %61 : vector<1x1x4x128xbf16> to vector<4x128xbf16>
    %cst_46 = arith.constant dense<0.000000e+00> : vector<256x128xf32>
    %63 = tpu.matmul %60, %62, %cst_46 {dimension_numbers = #tpu.dot_dimension_numbers<[1], [0], [0], [1], [0, 0, 1, 1], [], []>} : vector<256x4xbf16>, vector<4x128xbf16>, vector<256x128xf32> -> vector<256x128xf32>
    %64 = arith.addf %58, %63 : vector<256x128xf32>
    %65 = vector.extract_strided_slice %15 {offsets = [2, 2, 0], sizes = [16, 16, 4], strides = [1, 1, 1]} : vector<18x18x4xbf16> to vector<16x16x4xbf16>
    %66 = vector.shape_cast %65 : vector<16x16x4xbf16> to vector<256x4xbf16>
    %c2_47 = arith.constant 2 : index
    %c2_48 = arith.constant 2 : index
    %c0_49 = arith.constant 0 : index
    %c0_50 = arith.constant 0 : index
    %67 = vector.load %arg2[%c2_47, %c2_48, %c0_49, %c0_50] : memref<3x3x4x128xbf16, #tpu.memory_space<vmem>>, vector<1x1x4x128xbf16>
    %68 = vector.shape_cast %67 : vector<1x1x4x128xbf16> to vector<4x128xbf16>
    %cst_51 = arith.constant dense<0.000000e+00> : vector<256x128xf32>
    %69 = tpu.matmul %66, %68, %cst_51 {dimension_numbers = #tpu.dot_dimension_numbers<[1], [0], [0], [1], [0, 0, 1, 1], [], []>} : vector<256x4xbf16>, vector<4x128xbf16>, vector<256x128xf32> -> vector<256x128xf32>
    %70 = arith.addf %64, %69 : vector<256x128xf32>
    %c0_52 = arith.constant 0 : index
    %c0_53 = arith.constant 0 : index
    %71 = vector.load %arg3[%c0_52, %c0_53] : memref<1x128xf32, #tpu.memory_space<vmem>>, vector<1x128xf32>
    %72 = vector.broadcast %71 : vector<1x128xf32> to vector<256x128xf32>
    %73 = arith.addf %70, %72 : vector<256x128xf32>
    %74 = math.roundeven %73 : vector<256x128xf32>
    %cst_54 = arith.constant 0.000000e+00 : f32
    %cst_55 = arith.constant 2.550000e+02 : f32
    %75 = vector.broadcast %cst_54 : f32 to vector<256x128xf32>
    %76 = arith.maximumf %75, %74 : vector<256x128xf32>
    %77 = vector.broadcast %cst_55 : f32 to vector<256x128xf32>
    %78 = arith.minimumf %77, %76 : vector<256x128xf32>
    %79 = vector.shape_cast %78 : vector<256x128xf32> to vector<16x16x128xf32>
    %c0_56 = arith.constant 0 : index
    %c0_57 = arith.constant 0 : index
    %c0_58 = arith.constant 0 : index
    %c0_59 = arith.constant 0 : index
    %80 = vector.load %arg4[%c0_56, %c0_57, %c0_58, %c0_59] : memref<1x16x16x128xf32, #tpu.memory_space<vmem>>, vector<1x16x16x128xf32>
    %81 = vector.shape_cast %80 : vector<1x16x16x128xf32> to vector<16x16x128xf32>
    %82 = vector.shape_cast %79 : vector<16x16x128xf32> to vector<1x16x16x128xf32>
    tpu.vector_store %arg4[%c0_56, %c0_57, %c0_58, %c0_59], %82 {strides = array<i32>} : memref<1x16x16x128xf32, #tpu.memory_space<vmem>>, vector<1x16x16x128xf32>,
    return
  }
  func.func @transform_0(%arg0: i32) -> (i32, i32, i32, i32) {
    %c0_i32 = arith.constant 0 : i32
    %c0_i32_0 = arith.constant 0 : i32
    %c0_i32_1 = arith.constant 0 : i32
    %c0_i32_2 = arith.constant 0 : i32
    return %arg0, %c0_i32, %c0_i32_0, %c0_i32_1 : i32, i32, i32, i32
  }
  func.func @transform_1(%arg0: i32) -> (i32, i32, i32, i32) {
    %c0_i32 = arith.constant 0 : i32
    %c0_i32_0 = arith.constant 0 : i32
    %c0_i32_1 = arith.constant 0 : i32
    %c0_i32_2 = arith.constant 0 : i32
    %c0_i32_3 = arith.constant 0 : i32
    return %c0_i32, %c0_i32_0, %c0_i32_1, %c0_i32_2 : i32, i32, i32, i32
  }
  func.func @transform_2(%arg0: i32) -> (i32, i32) {
    %c0_i32 = arith.constant 0 : i32
    %c0_i32_0 = arith.constant 0 : i32
    %c0_i32_1 = arith.constant 0 : i32
    return %c0_i32, %c0_i32_0 : i32, i32
  }
  func.func @transform_3(%arg0: i32) -> (i32, i32, i32, i32) {
    %c0_i32 = arith.constant 0 : i32
    %c0_i32_0 = arith.constant 0 : i32
    %c0_i32_1 = arith.constant 0 : i32
    %c0_i32_2 = arith.constant 0 : i32
    return %arg0, %c0_i32, %c0_i32_0, %c0_i32_1 : i32, i32, i32, i32
  }
}

</mosaic_0001>

<bundles_post_ra>
// kernel: op.1
= control target key start
LH: loop header
LB: loop body
LE: loop exit
PB: predicated region body
PF: predicated region fallthrough
CT: control target
= control target key end

     0   :  { %8 = vsyncpa [#allocation3], 0  ;;  %s5076_s0 = inlined_call_operand.vmem [shape: f32[2,18,18,4], index: 0, kind: input, shape index: {}]   ;;  %s5077_s1 = inlined_call_operand.vmem [shape: bf16[3,3,4,128], index: 1, kind: input, shape index: {}]   ;;  %s5078_s2 = inlined_call_operand.vmem [shape: f32[1,128], index: 2, kind: input, shape index: {}]   ;;  %s5079_s3 = inlined_call_operand.hbm [shape: f32[2,16,16,128], index: 3, kind: output, shape index: {}]  }
   0x1   :  { %10 = vsyncpa [#allocation3 + $0x1], 0  ;;  %s4215_s12 = smov 0   ;;  %s4217_s13 = smov 0  }
   0x2   :  { %s4219_s14 = smov 0   ;;  %s4221_s15 = smov 0  }
   0x3 LB: > { %s4236_s16 = sadd.s32 4294967295, %s4190_s15   ;;  %s3052_s17 = sadd.s32 4294967294, %s4190_s15   ;;  %s4190_s15 = sphi %s4221_s15, %s5104_s15   ;;  %s4186_s14 = sphi %s4219_s14, %s5103_s14   ;;  %s4182_s13 = sphi %s4217_s13, %s5102_s13   ;;  %s4178_s12 = sphi %s4215_s12, %s5101_s12  }
   0x4   : > { %s4240_s18 = sadd.s32 1, %s4190_s15   ;;  %s91_s19 = sadd.s32 1, %s4186_s14 }
   0x5   : > { %s88_s20 = ssub.s32 %s4190_s15, %s4240_s18  ;;  %p101_p0 = scmp.ne.s32.totalorder %s4186_s14, %s4182_s13 }
   0x6   : > { %p89_p1 = scmp.eq.s32.totalorder %s88_s20, 0  ;;  %p102_p2 = scmp.eq.s32.totalorder %s4236_s16, 1 }
   0x7   : > { %p107_p3 = scmp.ne.s32.totalorder %s4182_s13, %s4178_s12  ;;  %p108_p4 = scmp.eq.s32.totalorder %s3052_s17, 1 }
   0x8   : > { %s4251_s21 = scalar_select %p89_p1, %s4186_s14, %s91_s19  }
   0x9   : > { %p4253_p5 = por %p102_p2, %p101_p0  ;;  %p4257_p6 = por %p108_p4, %p107_p3 }
   0xa   : > { %p3055_p7 = scmp.ge.s32.totalorder %s4190_s15, 1  ;;  %p140_p8 = scmp.lt.s32.totalorder %s4190_s15, 3 }
   0xc   : > { %p141_p9 = pnand %p3055_p7, %p140_p8 }
   0xe   : > { %144 = sbr.rel (%p141_p9) target bundleno = 631 (0x277), region = 32 }
  0x15   : > { %v3112_v0 = vld [vmem:[%s5077_s1 + $0x2] sm:$0x3]  ;;  %vm883_vm0 = vcmask 1041408   ;;  %v3179_v1 = vld [vmem:[%s5077_s1 + $0x8] sm:$0x3]  ;;  %p164_p10 = scmp.lt.s32.totalorder %s4236_s16, 1 }
  0x16   : > { %3988 = vmatprep.subr.msk.bf16.mxu1 %vm883_vm0, %v3112_v0  ;;  %3992 = vmatprep.subr.msk.bf16.mxu0 %vm883_vm0, %v3179_v1  ;;  %v885_v2 = vsel %vm883_vm0, %v3112_v0, 0  ;;  %v4274_v3 = vsel %vm883_vm0, %v3179_v1, 0  ;;  %v638_v4 = vld [vmem:[%s5077_s1] sm:$0x3]  ;;  %v3196_v5 = vld [vmem:[%s5077_s1 + $0xa] sm:$0x3] }
  0x17   : > { %5091 = vst [vmem:[#allocation5_spill] sm:$0xff] %v4274_v3  ;;  %3425 = vmatpush3.bf16.msra.mxu1 %v885_v2  ;;  %3561 = vmatpush3.bf16.msra.mxu0 %v4274_v3  ;;  %s165_s28 = scalar_select %p164_p10, %s4236_s16, 1  ;;  %v4294_v6 = vld [vmem:[%s5077_s1 + $0xc] sm:$0x3]  ;;  %v4300_v10 = vsel %vm883_vm0, %v638_v4, 0  ;;  %v4306_v17 = vsel %vm883_vm0, %v3196_v5, 0 }
  0x18   : > { %3989 = vmatprep.subr.msk.bf16.mxu1 %vm883_vm0, %v638_v4  ;;  %3994 = vmatprep.subr.msk.bf16.mxu0 %vm883_vm0, %v3196_v5  ;;  %v4310_v18 = vsel %vm883_vm0, %v4294_v6, 0  ;;  %vm639_vm1 = vsmask.f32 7424  ;;  %vm834_vm2 = vcmask 31744   ;;  %vm1276_vm3 = vcmask 1046528   ;;  %s161_s8 = sand.u32 1, %s4182_s13  }
  0x19   : > { %s3998_s6 = smul.u32 432, %s165_s28  ;;  %s3270_s11 = sshll.u32 %s4236_s16, 12 }
  0x1a   : > { %s5026_s24 = scalar_lea.hbm %s5079_s3, %s3270_s11  ;;  %s5035_s16 = scalar_lea.sflag [#allocation3], %s161_s8 }
  0x1b   : > { %s4289_s9 = scalar_lea.vmem %s5076_s0, %s3998_s6  ;;  %s4192_s26 = smov [#allocation2]  }
  0x1c   : > { %v170_v7 = vld [vmem:[%s4289_s9] sm:$0xff]  ;;  %v171_v8 = vld [vmem:[%s4289_s9 + $0x8] sm:$0xff]  ;;  %v172_v9 = vld [vmem:[%s4289_s9 + $0x10] sm:$0x3]  ;;  %s4132_s27 = sshll.u32 %s4192_s26, 4  ;;  %s4133_s27 = int_to_ptr.vmem [resolvable:$false] %s4132_s27 }
  0x1d   : > { %v224_v11 = vmul.f32 21.186441, %v170_v7  ;;  %v225_v12 = vmul.f32 21.186441, %v171_v8  ;;  %v226_v13 = vmul.f32 21.186441, %v172_v9 }
  0x1e   : > { %v173_v14 = vld [vmem:[%s4289_s9 + $0x18] sm:$0xff]  ;;  %v174_v15 = vld [vmem:[%s4289_s9 + $0x20] sm:$0xff]  ;;  %v175_v16 = vld [vmem:[%s4289_s9 + $0x28] sm:$0x3]  ;;  %s4134_s28 = scalar_lea.vmem %s4133_s27, 8192 }
  0x1f   : > { %v3999_v19 = vround.rtne.f32 %v224_v11  ;;  %v4000_v20 = vround.rtne.f32 %v225_v12  ;;  %v4001_v21 = vround.rtne.f32 %v226_v13  ;;  %v227_v22 = vmul.f32 21.186441, %v173_v14  ;;  %v176_v23 = vld [vmem:[%s4289_s9 + $0x30] sm:$0xff]  ;;  %v177_v24 = vld [vmem:[%s4289_s9 + $0x38] sm:$0xff]  ;;  %v178_v25 = vld [vmem:[%s4289_s9 + $0x40] sm:$0x3] }
  0x20   : > { %v228_v26 = vmul.f32 21.186441, %v174_v15  ;;  %v229_v27 = vmul.f32 21.186441, %v175_v16  ;;  %v230_v28 = vmul.f32 21.186441, %v176_v23 }
  0x21   : > { %v332_v29 = vadd.f32 64.0, %v3999_v19  ;;  %v333_v30 = vadd.f32 64.0, %v4000_v20  ;;  %v334_v31 = vadd.f32 64.0, %v4001_v21  ;;  %v4002_v32 = vround.rtne.f32 %v227_v22  ;;  %v179_v11 = vld [vmem:[%s4289_s9 + $0x48] sm:$0xff] }
  0x22   : > { %v4003_v33 = vround.rtne.f32 %v228_v26  ;;  %v4004_v34 = vround.rtne.f32 %v229_v27  ;;  %v231_v35 = vmul.f32 21.186441, %v177_v24  ;;  %v232_v36 = vmul.f32 21.186441, %v178_v25  ;;  %v180_v25 = vld [vmem:[%s4289_s9 + $0x50] sm:$0xff] }
  0x23   : > { %v386_v37 = vmax.f32 %v332_v29, 0.0  ;;  %v387_v38 = vmax.f32 %v333_v30, 0.0  ;;  %v388_v39 = vmax.f32 %v334_v31, 0.0  ;;  %v335_v40 = vadd.f32 64.0, %v4002_v32  ;;  %v181_v26 = vld [vmem:[%s4289_s9 + $0x58] sm:$0x3] }
  0x24   : > { %v336_v41 = vadd.f32 64.0, %v4003_v33  ;;  %v337_v42 = vadd.f32 64.0, %v4004_v34  ;;  %v4005_v43 = vround.rtne.f32 %v230_v28  ;;  %v4006_v44 = vround.rtne.f32 %v231_v35  ;;  %v182_v35 = vld [vmem:[%s4289_s9 + $0x60] sm:$0xff] }
  0x25   : > { %v440_v45 = vmin.f32 %v386_v37, 255.0  ;;  %v441_v46 = vmin.f32 %v387_v38, 255.0  ;;  %v442_v47 = vmin.f32 %v388_v39, 255.0  ;;  %v389_v48 = vmax.f32 %v335_v40, 0.0  ;;  %v183_v40 = vld [vmem:[%s4289_s9 + $0x68] sm:$0xff] }
  0x26   : > { %v390_v49 = vmax.f32 %v336_v41, 0.0  ;;  %v391_v50 = vmax.f32 %v337_v42, 0.0  ;;  %v4007_v51 = vround.rtne.f32 %v232_v36  ;;  %v338_v52 = vadd.f32 64.0, %v4005_v43 }
  0x27   : > { %v3058_v53 = vadd.f32 -64.0, %v440_v45  ;;  %v3059_v54 = vadd.f32 -64.0, %v441_v46  ;;  %v3060_v55 = vadd.f32 -64.0, %v442_v47  ;;  %v443_v56 = vmin.f32 %v389_v48, 255.0 }
  0x28   : > { %v444_v57 = vmin.f32 %v390_v49, 255.0  ;;  %v445_v58 = vmin.f32 %v391_v50, 255.0  ;;  %v339_v59 = vadd.f32 64.0, %v4006_v44  ;;  %v340_v60 = vadd.f32 64.0, %v4007_v51 }
  0x29   : > { %v548_v61 = vmul.f32 0.0472, %v3058_v53  ;;  %v549_v62 = vmul.f32 0.0472, %v3059_v54  ;;  %v550_v63 = vmul.f32 0.0472, %v3060_v55 }
  0x2a   : > { %v3061_v0 = vadd.f32 -64.0, %v443_v56  ;;  %v3062_v1 = vadd.f32 -64.0, %v444_v57  ;;  %v3063_v2 = vadd.f32 -64.0, %v445_v58  ;;  %v392_v4 = vmax.f32 %v338_v52, 0.0  ;;  %v184_v56 = vld [vmem:[%s4289_s9 + $0x70] sm:$0x3] }
  0x2b   : > { %v4315_v5 = vpack.c.bf16 %v549_v62, %v548_v61  ;;  %v4317_v7 = vpack.c.bf16 %v550_v63, %v550_v63  ;;  %v393_v8 = vmax.f32 %v339_v59, 0.0  ;;  %v394_v9 = vmax.f32 %v340_v60, 0.0 }
  0x2c   : > { %v551_v12 = vmul.f32 0.0472, %v3061_v0  ;;  %v552_v13 = vmul.f32 0.0472, %v3062_v1  ;;  %v553_v14 = vmul.f32 0.0472, %v3063_v2 }
  0x2d   : > { %v641_v15 = vshrl.u32 %v4315_v5, 16  ;;  %v643_v16 = vshll.u32 %v4315_v5, 16  ;;  %v648_v19 = vshll.u32 %v4317_v7, 16  ;;  %v446_v20 = vmin.f32 %v392_v4, 255.0 }
  0x2e   : > { %v4323_v21 = vpack.c.bf16 %v552_v13, %v551_v12  ;;  %v4325_v22 = vpack.c.bf16 %v553_v14, %v553_v14  ;;  %v447_v23 = vmin.f32 %v393_v8, 255.0  ;;  %v448_v24 = vmin.f32 %v394_v9, 255.0 }
  0x2f   : > { %v645_v27 = vrot.slane %v643_v16, 1  ;;  %v650_v28 = vrot.slane %v648_v19, 1  ;;  %v3064_v29 = vadd.f32 -64.0, %v446_v20  ;;  %v233_v30 = vmul.f32 21.186441, %v179_v11  ;;  %v185_v11 = vld [vmem:[%s4289_s9 + $0x78] sm:$0xff] }
  0x30   : > { %v653_v31 = vshrl.u32 %v4323_v21, 16  ;;  %v655_v32 = vshll.u32 %v4323_v21, 16  ;;  %v660_v33 = vshll.u32 %v4325_v22, 16  ;;  %v3065_v34 = vadd.f32 -64.0, %v447_v23  ;;  %v3145_v16 = vld [vmem:[%s5077_s1 + $0x4] sm:$0x3] }
  0x31   : > { %v646_v36 = vor.u32 %v645_v27, %v641_v15  ;;  %v3066_v37 = vadd.f32 -64.0, %v448_v24  ;;  %v554_v38 = vmul.f32 0.0472, %v3064_v29  ;;  %v234_v39 = vmul.f32 21.186441, %v180_v25  ;;  %v186_v27 = vld [vmem:[%s4289_s9 + $0x80] sm:$0xff] }
  0x32   : > { %v657_v41 = vrot.slane %v655_v32, 1  ;;  %v662_v42 = vrot.slane %v660_v33, 1  ;;  %v555_v43 = vmul.f32 0.0472, %v3065_v34  ;;  %v235_v44 = vmul.f32 21.186441, %v181_v26 }
  0x33   : > { %v651_v45 = vsel %vm639_vm1, %v646_v36, %v650_v28  ;;  %v556_v46 = vmul.f32 0.0472, %v3066_v37  ;;  %v4008_v47 = vround.rtne.f32 %v233_v30  ;;  %v4009_v48 = vround.rtne.f32 %v234_v39  ;;  %v187_v33 = vld [vmem:[%s4289_s9 + $0x88] sm:$0x3] }
  0x34   : > { %3426 = vmatprep.mubr.msk.bf16.mxu1 %vm834_vm2, %v651_v45  ;;  %v658_v49 = vor.u32 %v657_v41, %v653_v31  ;;  %v4336_v50 = vpack.c.bf16 %v555_v43, %v554_v38  ;;  %v4010_v51 = vround.rtne.f32 %v235_v44  ;;  %v236_v52 = vmul.f32 21.186441, %v182_v35 }
  0x35   : > { %v4338_v53 = vpack.c.bf16 %v556_v46, %v556_v46  ;;  %v341_v54 = vadd.f32 64.0, %v4008_v47  ;;  %v342_v55 = vadd.f32 64.0, %v4009_v48  ;;  %v237_v57 = vmul.f32 21.186441, %v183_v40 }
  0x36   : > { %v663_v58 = vsel %vm639_vm1, %v658_v49, %v662_v42  ;;  %v665_v59 = vshrl.u32 %v4336_v50, 16  ;;  %v667_v60 = vshll.u32 %v4336_v50, 16  ;;  %v343_v61 = vadd.f32 64.0, %v4010_v51 }
  0x37   : > { %3562 = vmatprep.mubr.msk.bf16.mxu0 %vm834_vm2, %v663_v58  ;;  %3427 = vmatmul.mubr.msk.bf16.vlgmr.msra.gmra.mrb[0].mxu1 %vm834_vm2, %v663_v58  ;;  %v672_v62 = vshll.u32 %v4338_v53, 16  ;;  %v1284_v63 = vrot.slane %v4338_v53, 1  ;;  %v395_v0 = vmax.f32 %v341_v54, 0.0  ;;  %v396_v1 = vmax.f32 %v342_v55, 0.0  ;;  %v188_v55 = vld [vmem:[%s4289_s9 + $0x90] sm:$0xff] }
  0x38   : > { %3459 = vmatpush3.bf16.msra.mxu1 %v4300_v10  ;;  %v669_v2 = vrot.slane %v667_v60, 1  ;;  %v397_v4 = vmax.f32 %v343_v61, 0.0  ;;  %v238_v8 = vmul.f32 21.186441, %v184_v56  ;;  %v4011_v9 = vround.rtne.f32 %v236_v52  ;;  %v190_v56 = vld [vmem:[%s4289_s9 + $0xa0] sm:$0x3] }
  0x39   : > { %v674_v12 = vrot.slane %v672_v62, 1  ;;  %v449_v13 = vmin.f32 %v395_v0, 255.0  ;;  %v450_v14 = vmin.f32 %v396_v1, 255.0  ;;  %v4012_v15 = vround.rtne.f32 %v237_v57  ;;  %3990 = vmatprep.subr.msk.bf16.mxu1 %vm883_vm0, %v3145_v16  ;;  %v189_v1 = vld [vmem:[%s4289_s9 + $0x98] sm:$0xff] }
  0x3a   : > { %v670_v19 = vor.u32 %v669_v2, %v665_v59  ;;  %v451_v20 = vmin.f32 %v397_v4, 255.0  ;;  %v4013_v23 = vround.rtne.f32 %v238_v8  ;;  %v344_v24 = vadd.f32 64.0, %v4011_v9 }
  0x3b   : > { %v3067_v10 = vadd.f32 -64.0, %v449_v13  ;;  %v3068_v25 = vadd.f32 -64.0, %v450_v14  ;;  %v345_v26 = vadd.f32 64.0, %v4012_v15  ;;  %v239_v28 = vmul.f32 21.186441, %v185_v11 }
  0x3c   : > { %v4356_v29 = vsel %vm639_vm1, %v670_v19, %v674_v12  ;;  %v3069_v30 = vadd.f32 -64.0, %v451_v20  ;;  %v346_v31 = vadd.f32 64.0, %v4013_v23  ;;  %v398_v32 = vmax.f32 %v344_v24, 0.0 }
  0x3d   : > { %3563 = vmatmul.mubr.msk.bf16.vlgmr.msra.gmra.mrb[0].mxu0 %vm834_vm2, %v4356_v29  ;;  %3430 = vmatprep.mubr.msk.bf16.mxu1 %vm834_vm2, %v4356_v29  ;;  %v557_v34 = vmul.f32 0.0472, %v3067_v10  ;;  %v558_v35 = vmul.f32 0.0472, %v3068_v25  ;;  %v399_v36 = vmax.f32 %v345_v26, 0.0  ;;  %v4014_v37 = vround.rtne.f32 %v239_v28 }
  0x3e   : > { %3595 = vmatpush3.bf16.msra.mxu0 %v4306_v17  ;;  %v559_v38 = vmul.f32 0.0472, %v3069_v30  ;;  %v400_v39 = vmax.f32 %v346_v31, 0.0  ;;  %v452_v40 = vmin.f32 %v398_v32, 255.0  ;;  %v240_v41 = vmul.f32 21.186441, %v186_v27 }
  0x3f   : > { %v4364_v42 = vpack.c.bf16 %v558_v35, %v557_v34  ;;  %v453_v43 = vmin.f32 %v399_v36, 255.0  ;;  %v241_v44 = vmul.f32 21.186441, %v187_v33  ;;  %v347_v45 = vadd.f32 64.0, %v4014_v37  ;;  %3995 = vmatprep.subr.msk.bf16.mxu0 %vm883_vm0, %v4294_v6  ;;  %v191_v35 = vld [vmem:[%s4289_s9 + $0xa8] sm:$0xff]  ;;  %v192_v36 = vld [vmem:[%s4289_s9 + $0xb0] sm:$0xff] }
  0x40   : > { %v4368_v46 = vpack.c.bf16 %v559_v38, %v559_v38  ;;  %v454_v47 = vmin.f32 %v400_v39, 255.0  ;;  %v3070_v48 = vadd.f32 -64.0, %v452_v40  ;;  %v4015_v17 = vround.rtne.f32 %v240_v41 }
  0x41   : > { %v677_v49 = vshrl.u32 %v4364_v42, 16  ;;  %v679_v51 = vshll.u32 %v4364_v42, 16  ;;  %v3071_v52 = vadd.f32 -64.0, %v453_v43  ;;  %v4016_v54 = vround.rtne.f32 %v241_v44 }
  0x42   : > { %v684_v57 = vshll.u32 %v4368_v46, 16  ;;  %v3072_v58 = vadd.f32 -64.0, %v454_v47  ;;  %v560_v59 = vmul.f32 0.0472, %v3070_v48  ;;  %v348_v60 = vadd.f32 64.0, %v4015_v17 }
  0x43   : > { %v681_v6 = vrot.slane %v679_v51, 1  ;;  %v561_v61 = vmul.f32 0.0472, %v3071_v52  ;;  %v349_v62 = vadd.f32 64.0, %v4016_v54  ;;  %v401_v0 = vmax.f32 %v347_v45, 0.0 }
  0x44   : > { %v686_v2 = vrot.slane %v684_v57, 1  ;;  %v562_v4 = vmul.f32 0.0472, %v3072_v58  ;;  %v402_v8 = vmax.f32 %v348_v60, 0.0  ;;  %v242_v9 = vmul.f32 21.186441, %v188_v55 }
  0x45   : > { %v682_v11 = vor.u32 %v681_v6, %v677_v49  ;;  %v4376_v12 = vpack.c.bf16 %v561_v61, %v560_v59  ;;  %v403_v13 = vmax.f32 %v349_v62, 0.0  ;;  %v455_v14 = vmin.f32 %v401_v0, 255.0  ;;  %v193_v47 = vld [vmem:[%s4289_s9 + $0xb8] sm:$0x3] }
  0x46   : > { %v4378_v15 = vpack.c.bf16 %v562_v4, %v562_v4  ;;  %v456_v16 = vmin.f32 %v402_v8, 255.0  ;;  %v243_v19 = vmul.f32 21.186441, %v189_v1  ;;  %v244_v20 = vmul.f32 21.186441, %v190_v56 }
  0x47   : > { %v4381_v23 = vsel %vm639_vm1, %v682_v11, %v686_v2  ;;  %v689_v24 = vshrl.u32 %v4376_v12, 16  ;;  %v691_v10 = vshll.u32 %v4376_v12, 16  ;;  %v457_v25 = vmin.f32 %v403_v13, 255.0 }
  0x48   : > { %3566 = vmatprep.mubr.msk.bf16.mxu0 %vm834_vm2, %v4381_v23  ;;  %3431 = vmatmul.mubr.msk.bf16.gmra.mrb[4].mxu1 %vm834_vm2, %v4381_v23  ;;  %v696_v26 = vshll.u32 %v4378_v15, 16  ;;  %v3073_v27 = vadd.f32 -64.0, %v455_v14  ;;  %v3074_v28 = vadd.f32 -64.0, %v456_v16  ;;  %v4017_v30 = vround.rtne.f32 %v242_v9  ;;  %v194_v16 = vld [vmem:[%s4289_s9 + $0xc0] sm:$0xff] }
  0x49   : > { %v693_v31 = vrot.slane %v691_v10, 1  ;;  %v3075_v32 = vadd.f32 -64.0, %v457_v25  ;;  %v4018_v33 = vround.rtne.f32 %v243_v19  ;;  %v4019_v34 = vround.rtne.f32 %v244_v20  ;;  %v195_v19 = vld [vmem:[%s4289_s9 + $0xc8] sm:$0xff] }
  0x4a   : > { %v698_v37 = vrot.slane %v696_v26, 1  ;;  %v563_v38 = vmul.f32 0.0472, %v3073_v27  ;;  %v564_v39 = vmul.f32 0.0472, %v3074_v28  ;;  %v350_v40 = vadd.f32 64.0, %v4017_v30 }
  0x4b   : > { %v694_v41 = vor.u32 %v693_v31, %v689_v24  ;;  %v565_v43 = vmul.f32 0.0472, %v3075_v32  ;;  %v351_v44 = vadd.f32 64.0, %v4018_v33  ;;  %v352_v45 = vadd.f32 64.0, %v4019_v34  ;;  %v196_v26 = vld [vmem:[%s4289_s9 + $0xd0] sm:$0x3] }
  0x4c   : > { %v4393_v48 = vpack.c.bf16 %v564_v39, %v563_v38  ;;  %v404_v17 = vmax.f32 %v350_v40, 0.0  ;;  %v245_v49 = vmul.f32 21.186441, %v191_v35  ;;  %v246_v51 = vmul.f32 21.186441, %v192_v36 }
  0x4d   : > { %v4396_v52 = vsel %vm639_vm1, %v694_v41, %v698_v37  ;;  %v4398_v54 = vpack.c.bf16 %v565_v43, %v565_v43  ;;  %v405_v55 = vmax.f32 %v351_v44, 0.0  ;;  %v406_v56 = vmax.f32 %v352_v45, 0.0 }
  0x4e   : > { %3567 = vmatmul.mubr.msk.bf16.gmra.mrb[4].mxu0 %vm834_vm2, %v4396_v52  ;;  %3434 = vmatprep.mubr.msk.bf16.mxu1 %vm834_vm2, %v4396_v52  ;;  %v701_v57 = vshrl.u32 %v4393_v48, 16  ;;  %v703_v58 = vshll.u32 %v4393_v48, 16  ;;  %v458_v59 = vmin.f32 %v404_v17, 255.0  ;;  %v247_v60 = vmul.f32 21.186441, %v193_v47 }
  0x4f   : > { %v708_v6 = vshll.u32 %v4398_v54, 16  ;;  %v459_v61 = vmin.f32 %v405_v55, 255.0  ;;  %v460_v62 = vmin.f32 %v406_v56, 255.0  ;;  %v4020_v0 = vround.rtne.f32 %v245_v49 }
  0x50   : > { %v705_v1 = vrot.slane %v703_v58, 1  ;;  %v3076_v2 = vadd.f32 -64.0, %v458_v59  ;;  %v4021_v4 = vround.rtne.f32 %v246_v51  ;;  %v4022_v8 = vround.rtne.f32 %v247_v60  ;;  %v197_v58 = vld [vmem:[%s4289_s9 + $0xd8] sm:$0xff] }
  0x51   : > { %v710_v9 = vrot.slane %v708_v6, 1  ;;  %v3077_v11 = vadd.f32 -64.0, %v459_v61  ;;  %v3078_v13 = vadd.f32 -64.0, %v460_v62  ;;  %v353_v14 = vadd.f32 64.0, %v4020_v0  ;;  %v198_v62 = vld [vmem:[%s4289_s9 + $0xe0] sm:$0xff] }
  0x52   : > { %v706_v20 = vor.u32 %v705_v1, %v701_v57  ;;  %v566_v24 = vmul.f32 0.0472, %v3076_v2  ;;  %v354_v10 = vadd.f32 64.0, %v4021_v4  ;;  %v355_v25 = vadd.f32 64.0, %v4022_v8 }
  0x53   : > { %v567_v27 = vmul.f32 0.0472, %v3077_v11  ;;  %v568_v28 = vmul.f32 0.0472, %v3078_v13  ;;  %v407_v30 = vmax.f32 %v353_v14, 0.0  ;;  %v1280_v31 = vrot.slane %v4323_v21, 1 }
  0x54   : > { %v4412_v32 = vsel %vm639_vm1, %v706_v20, %v710_v9  ;;  %v408_v33 = vmax.f32 %v354_v10, 0.0  ;;  %v409_v34 = vmax.f32 %v355_v25, 0.0  ;;  %v248_v35 = vmul.f32 21.186441, %v194_v16 }
  0x55   : > { %3570 = vmatprep.mubr.msk.bf16.mxu0 %vm834_vm2, %v4412_v32  ;;  %3435 = vmatmul.mubr.msk.bf16.gmra.mrb[8].mxu1 %vm834_vm2, %v4412_v32  ;;  %v4418_v36 = vpack.c.bf16 %v567_v27, %v566_v24  ;;  %v4420_v37 = vpack.c.bf16 %v568_v28, %v568_v28  ;;  %v461_v38 = vmin.f32 %v407_v30, 255.0  ;;  %v249_v39 = vmul.f32 21.186441, %v195_v19  ;;  %v199_v24 = vld [vmem:[%s4289_s9 + $0xe8] sm:$0x3] }
  0x56   : > { %v462_v40 = vmin.f32 %v408_v33, 255.0  ;;  %v463_v41 = vmin.f32 %v409_v34, 255.0  ;;  %v250_v43 = vmul.f32 21.186441, %v196_v26  ;;  %v4023_v44 = vround.rtne.f32 %v248_v35 }
  0x57   : > { %v713_v45 = vshrl.u32 %v4418_v36, 16  ;;  %v715_v47 = vshll.u32 %v4418_v36, 16  ;;  %v720_v17 = vshll.u32 %v4420_v37, 16  ;;  %v3079_v49 = vadd.f32 -64.0, %v461_v38 }
  0x58   : > { %v3080_v51 = vadd.f32 -64.0, %v462_v40  ;;  %v3081_v55 = vadd.f32 -64.0, %v463_v41  ;;  %v4024_v56 = vround.rtne.f32 %v249_v39  ;;  %v4025_v57 = vround.rtne.f32 %v250_v43 }
  0x59   : > { %v717_v59 = vrot.slane %v715_v47, 1  ;;  %v722_v60 = vrot.slane %v720_v17, 1  ;;  %v569_v6 = vmul.f32 0.0472, %v3079_v49  ;;  %v356_v61 = vadd.f32 64.0, %v4023_v44  ;;  %v200_v44 = vld [vmem:[%s4289_s9 + $0xf0] sm:$0xff] }
  0x5a   : > { %v570_v0 = vmul.f32 0.0472, %v3080_v51  ;;  %v571_v1 = vmul.f32 0.0472, %v3081_v55  ;;  %v357_v2 = vadd.f32 64.0, %v4024_v56  ;;  %v358_v4 = vadd.f32 64.0, %v4025_v57 }
  0x5b   : > { %v718_v8 = vor.u32 %v717_v59, %v713_v45  ;;  %v410_v9 = vmax.f32 %v356_v61, 0.0  ;;  %v1281_v11 = vrot.slane %v4325_v22, 1  ;;  %v251_v13 = vmul.f32 21.186441, %v197_v58  ;;  %v201_v51 = vld [vmem:[%s4289_s9 + $0xf8] sm:$0xff] }
  0x5c   : > { %v4428_v14 = vpack.c.bf16 %v570_v0, %v569_v6  ;;  %v4430_v16 = vpack.c.bf16 %v571_v1, %v571_v1  ;;  %v411_v19 = vmax.f32 %v357_v2, 0.0  ;;  %v412_v20 = vmax.f32 %v358_v4, 0.0  ;;  %v202_v59 = vld [vmem:[%s4289_s9 + $0x100] sm:$0x3] }
  0x5d   : > { %v4434_v10 = vsel %vm639_vm1, %v718_v8, %v722_v60  ;;  %v464_v25 = vmin.f32 %v410_v9, 255.0  ;;  %v4437_v26 = vsel %vm1276_vm3, %v1280_v31, %v1281_v11  ;;  %v252_v27 = vmul.f32 21.186441, %v198_v62 }
  0x5e   : > { %3571 = vmatmul.mubr.msk.bf16.gmra.mrb[8].mxu0 %vm834_vm2, %v4434_v10  ;;  %3438 = vmatprep.mubr.msk.bf16.mxu1 %vm834_vm2, %v4434_v10  ;;  %v725_v22 = vshrl.u32 %v4428_v14, 16  ;;  %v727_v28 = vshll.u32 %v4428_v14, 16  ;;  %v732_v30 = vshll.u32 %v4430_v16, 16  ;;  %v465_v33 = vmin.f32 %v411_v19, 255.0 }
  0x5f   : > { %v466_v34 = vmin.f32 %v412_v20, 255.0  ;;  %v3082_v35 = vadd.f32 -64.0, %v464_v25  ;;  %v253_v31 = vmul.f32 21.186441, %v199_v24  ;;  %v4026_v38 = vround.rtne.f32 %v251_v13 }
  0x60   : > { %v729_v39 = vrot.slane %v727_v28, 1  ;;  %v734_v40 = vrot.slane %v732_v30, 1  ;;  %v3083_v41 = vadd.f32 -64.0, %v465_v33  ;;  %v4027_v43 = vround.rtne.f32 %v252_v27 }
  0x61   : > { %v3084_v45 = vadd.f32 -64.0, %v466_v34  ;;  %v572_v47 = vmul.f32 0.0472, %v3082_v35  ;;  %v4028_v17 = vround.rtne.f32 %v253_v31  ;;  %v359_v49 = vadd.f32 64.0, %v4026_v38 }
  0x62   : > { %v730_v55 = vor.u32 %v729_v39, %v725_v22  ;;  %v573_v56 = vmul.f32 0.0472, %v3083_v41  ;;  %v360_v57 = vadd.f32 64.0, %v4027_v43  ;;  %v1283_v58 = vrot.slane %v4336_v50, 1 }
  0x63   : > { %v574_v60 = vmul.f32 0.0472, %v3084_v45  ;;  %v361_v6 = vadd.f32 64.0, %v4028_v17  ;;  %v413_v61 = vmax.f32 %v359_v49, 0.0  ;;  %v254_v62 = vmul.f32 21.186441, %v200_v44 }
  0x64   : > { %v4451_v0 = vsel %vm639_vm1, %v730_v55, %v734_v40  ;;  %v4453_v1 = vpack.c.bf16 %v573_v56, %v572_v47  ;;  %v414_v2 = vmax.f32 %v360_v57, 0.0  ;;  %v4458_v4 = vsel %vm1276_vm3, %v1283_v58, %v1284_v63  ;;  %v203_v45 = vld [vmem:[%s4289_s9 + $0x108] sm:$0xff] }
  0x65   : > { %3574 = vmatprep.mubr.msk.bf16.mxu0 %vm834_vm2, %v4451_v0  ;;  %3439 = vmatmul.mubr.msk.bf16.gmra.mrb[12].mxu1 %vm834_vm2, %v4451_v0  ;;  %v4464_v8 = vpack.c.bf16 %v574_v60, %v574_v60  ;;  %v415_v9 = vmax.f32 %v361_v6, 0.0  ;;  %v467_v11 = vmin.f32 %v413_v61, 255.0  ;;  %v255_v13 = vmul.f32 21.186441, %v201_v51  ;;  %v205_v60 = vld [vmem:[%s4289_s9 + $0x118] sm:$0x3] }
  0x66   : > { %v737_v19 = vshrl.u32 %v4453_v1, 16  ;;  %v739_v20 = vshll.u32 %v4453_v1, 16  ;;  %v468_v24 = vmin.f32 %v414_v2, 255.0  ;;  %v256_v53 = vmul.f32 21.186441, %v202_v59  ;;  %v204_v59 = vld [vmem:[%s4289_s9 + $0x110] sm:$0xff] }
  0x67   : > { %v744_v63 = vshll.u32 %v4464_v8, 16  ;;  %v469_v25 = vmin.f32 %v415_v9, 255.0  ;;  %v3085_v27 = vadd.f32 -64.0, %v467_v11  ;;  %v4029_v22 = vround.rtne.f32 %v254_v62 }
  0x68   : > { %v741_v28 = vrot.slane %v739_v20, 1  ;;  %v3086_v30 = vadd.f32 -64.0, %v468_v24  ;;  %v4030_v33 = vround.rtne.f32 %v255_v13  ;;  %v4031_v34 = vround.rtne.f32 %v256_v53 }
  0x69   : > { %v746_v35 = vrot.slane %v744_v63, 1  ;;  %v3087_v31 = vadd.f32 -64.0, %v469_v25  ;;  %v575_v38 = vmul.f32 0.0472, %v3085_v27  ;;  %v362_v39 = vadd.f32 64.0, %v4029_v22 }
  0x6a   : > { %v742_v40 = vor.u32 %v741_v28, %v737_v19  ;;  %v576_v41 = vmul.f32 0.0472, %v3086_v30  ;;  %v363_v43 = vadd.f32 64.0, %v4030_v33  ;;  %v364_v44 = vadd.f32 64.0, %v4031_v34 }
  0x6b   : > { %v577_v47 = vmul.f32 0.0472, %v3087_v31  ;;  %v416_v17 = vmax.f32 %v362_v39, 0.0  ;;  %v1286_v49 = vrot.slane %v4364_v42, 1  ;;  %v1287_v51 = vrot.slane %v4368_v46, 1 }
  0x6c   : > { %v4473_v55 = vsel %vm639_vm1, %v742_v40, %v746_v35  ;;  %v4475_v56 = vpack.c.bf16 %v576_v41, %v575_v38  ;;  %v417_v57 = vmax.f32 %v363_v43, 0.0  ;;  %v418_v58 = vmax.f32 %v364_v44, 0.0  ;;  %v206_v40 = vld [vmem:[%s4289_s9 + $0x120] sm:$0xff] }
  0x6d   : > { %3575 = vmatmul.mubr.msk.bf16.gmra.mrb[12].mxu0 %vm834_vm2, %v4473_v55  ;;  %3442 = vmatprep.mubr.msk.bf16.mxu1 %vm834_vm2, %v4473_v55  ;;  %v4483_v6 = vpack.c.bf16 %v577_v47, %v577_v47  ;;  %v470_v61 = vmin.f32 %v416_v17, 255.0  ;;  %v4486_v46 = vsel %vm1276_vm3, %v1286_v49, %v1287_v51  ;;  %v257_v62 = vmul.f32 21.186441, %v203_v45 }
  0x6e   : > { %3596 = vmatprep.mubr.msk.bf16.mxu0 %vm834_vm2, %v4437_v26  ;;  %v749_v2 = vshrl.u32 %v4475_v56, 16  ;;  %v751_v9 = vshll.u32 %v4475_v56, 16  ;;  %v471_v11 = vmin.f32 %v417_v57, 255.0  ;;  %v472_v13 = vmin.f32 %v418_v58, 255.0  ;;  %v207_v57 = vld [vmem:[%s4289_s9 + $0x128] sm:$0xff] }
  0x6f   : > { %v756_v19 = vshll.u32 %v4483_v6, 16  ;;  %v3088_v20 = vadd.f32 -64.0, %v470_v61  ;;  %v258_v24 = vmul.f32 21.186441, %v204_v59  ;;  %v259_v53 = vmul.f32 21.186441, %v205_v60 }
  0x70   : > { %v753_v63 = vrot.slane %v751_v9, 1  ;;  %v3089_v25 = vadd.f32 -64.0, %v471_v11  ;;  %v3090_v27 = vadd.f32 -64.0, %v472_v13  ;;  %v4032_v22 = vround.rtne.f32 %v257_v62  ;;  %v208_v58 = vld [vmem:[%s4289_s9 + $0x130] sm:$0x3] }
  0x71   : > { %v758_v28 = vrot.slane %v756_v19, 1  ;;  %v578_v30 = vmul.f32 0.0472, %v3088_v20  ;;  %v4033_v33 = vround.rtne.f32 %v258_v24  ;;  %v4034_v34 = vround.rtne.f32 %v259_v53  ;;  %v4508_v59 = vld [vmem:[%s5077_s1 + $0xe] sm:$0x3] }
  0x72   : > { %v754_v35 = vor.u32 %v753_v63, %v749_v2  ;;  %v579_v31 = vmul.f32 0.0472, %v3089_v25  ;;  %v580_v38 = vmul.f32 0.0472, %v3090_v27  ;;  %v365_v39 = vadd.f32 64.0, %v4032_v22 }
  0x73   : > { %v366_v41 = vadd.f32 64.0, %v4033_v33  ;;  %v367_v43 = vadd.f32 64.0, %v4034_v34  ;;  %v1289_v44 = vrot.slane %v4376_v12, 1  ;;  %v1290_v45 = vrot.slane %v4378_v15, 1  ;;  %v209_v34 = vld [vmem:[%s4289_s9 + $0x138] sm:$0xff] }
  0x74   : > { %v4497_v47 = vsel %vm639_vm1, %v754_v35, %v758_v28  ;;  %v4499_v17 = vpack.c.bf16 %v579_v31, %v578_v30  ;;  %v4501_v49 = vpack.c.bf16 %v580_v38, %v580_v38  ;;  %v419_v51 = vmax.f32 %v365_v39, 0.0  ;;  %v210_v35 = vld [vmem:[%s4289_s9 + $0x140] sm:$0xff] }
  0x75   : > { %3443 = vmatmul.mubr.msk.bf16.gmra.mrb[16].mxu1 %vm834_vm2, %v4497_v47  ;;  %3597 = vmatmul.mubr.msk.bf16.vlgmr.msra.gmra.mrb[0].mxu0 %vm834_vm2, %v4458_v4  ;;  %v420_v15 = vmax.f32 %v366_v41, 0.0  ;;  %v421_v60 = vmax.f32 %v367_v43, 0.0  ;;  %v4515_v61 = vsel %vm1276_vm3, %v1289_v44, %v1290_v45  ;;  %v260_v62 = vmul.f32 21.186441, %v206_v40  ;;  %v211_v41 = vld [vmem:[%s4289_s9 + $0x148] sm:$0x3] }
  0x76   : > { %3629 = vmatpush3.bf16.msra.mxu0 %v4310_v18  ;;  %v761_v2 = vshrl.u32 %v4499_v17, 16  ;;  %v763_v9 = vshll.u32 %v4499_v17, 16  ;;  %v768_v11 = vshll.u32 %v4501_v49, 16  ;;  %3600 = vmatprep.mubr.msk.bf16.mxu0 %vm834_vm2, %v4486_v46  ;;  %v473_v13 = vmin.f32 %v419_v51, 255.0 }
  0x77   : > { %v474_v19 = vmin.f32 %v420_v15, 255.0  ;;  %v475_v20 = vmin.f32 %v421_v60, 255.0  ;;  %v261_v24 = vmul.f32 21.186441, %v207_v57  ;;  %v262_v53 = vmul.f32 21.186441, %v208_v58  ;;  %3996 = vmatprep.subr.msk.bf16.mxu0 %vm883_vm0, %v4508_v59 }
  0x78   : > { %v765_v18 = vrot.slane %v763_v9, 1  ;;  %v770_v63 = vrot.slane %v768_v11, 1  ;;  %v3091_v25 = vadd.f32 -64.0, %v473_v13  ;;  %v4035_v27 = vround.rtne.f32 %v260_v62 }
  0x79   : > { %v3092_v22 = vadd.f32 -64.0, %v474_v19  ;;  %v3093_v28 = vadd.f32 -64.0, %v475_v20  ;;  %v4036_v30 = vround.rtne.f32 %v261_v24  ;;  %v4037_v33 = vround.rtne.f32 %v262_v53 }
  0x7a   : > { %v766_v31 = vor.u32 %v765_v18, %v761_v2  ;;  %v581_v38 = vmul.f32 0.0472, %v3091_v25  ;;  %v368_v39 = vadd.f32 64.0, %v4035_v27  ;;  %v1292_v40 = vrot.slane %v4393_v48, 1 }
  0x7b   : > { %v582_v43 = vmul.f32 0.0472, %v3092_v22  ;;  %v583_v44 = vmul.f32 0.0472, %v3093_v28  ;;  %v369_v45 = vadd.f32 64.0, %v4036_v30  ;;  %v370_v51 = vadd.f32 64.0, %v4037_v33 }
  0x7c   : > { %v4530_v57 = vsel %vm639_vm1, %v766_v31, %v770_v63  ;;  %v422_v58 = vmax.f32 %v368_v39, 0.0  ;;  %v1293_v15 = vrot.slane %v4398_v54, 1  ;;  %v263_v60 = vmul.f32 21.186441, %v209_v34 }
  0x7d   : > { %5092 = vst [vmem:[#allocation6_spill] sm:$0xff] %v4530_v57  ;;  %3446 = vmatprep.mubr.msk.bf16.mxu1 %vm834_vm2, %v4530_v57  ;;  %v4535_v62 = vpack.c.bf16 %v582_v43, %v581_v38  ;;  %v4537_v2 = vpack.c.bf16 %v583_v44, %v583_v44  ;;  %3601 = vmatmul.mubr.msk.bf16.gmra.mrb[4].mxu0 %vm834_vm2, %v4515_v61  ;;  %v423_v9 = vmax.f32 %v369_v45, 0.0  ;;  %v424_v11 = vmax.f32 %v370_v51, 0.0 }
  0x7e   : > { %v476_v13 = vmin.f32 %v422_v58, 255.0  ;;  %v4542_v19 = vsel %vm1276_vm3, %v1292_v40, %v1293_v15  ;;  %v264_v20 = vmul.f32 21.186441, %v210_v35  ;;  %v265_v24 = vmul.f32 21.186441, %v211_v41  ;;  %v212_v41 = vld [vmem:[%s4289_s9 + $0x150] sm:$0xff] }
  0x7f   : > { %v773_v54 = vshrl.u32 %v4535_v62, 16  ;;  %v775_v53 = vshll.u32 %v4535_v62, 16  ;;  %v780_v18 = vshll.u32 %v4537_v2, 16  ;;  %v477_v63 = vmin.f32 %v423_v9, 255.0  ;;  %3604 = vmatprep.mubr.msk.bf16.mxu0 %vm834_vm2, %v4542_v19 }
  0x80   : > { %v478_v25 = vmin.f32 %v424_v11, 255.0  ;;  %v3094_v27 = vadd.f32 -64.0, %v476_v13  ;;  %v4038_v22 = vround.rtne.f32 %v263_v60  ;;  %v4039_v28 = vround.rtne.f32 %v264_v20  ;;  %v213_v11 = vld [vmem:[%s4289_s9 + $0x158] sm:$0xff] }
  0x81   : > { %v777_v30 = vrot.slane %v775_v53, 1  ;;  %v782_v33 = vrot.slane %v780_v18, 1  ;;  %v3095_v34 = vadd.f32 -64.0, %v477_v63  ;;  %v4040_v35 = vround.rtne.f32 %v265_v24  ;;  %v214_v53 = vld [vmem:[%s4289_s9 + $0x160] sm:$0x3] }
  0x82   : > { %v3096_v31 = vadd.f32 -64.0, %v478_v25  ;;  %v584_v38 = vmul.f32 0.0472, %v3094_v27  ;;  %v371_v39 = vadd.f32 64.0, %v4038_v22  ;;  %v372_v40 = vadd.f32 64.0, %v4039_v28 }
  0x83   : > { %v778_v43 = vor.u32 %v777_v30, %v773_v54  ;;  %v585_v44 = vmul.f32 0.0472, %v3095_v34  ;;  %v373_v45 = vadd.f32 64.0, %v4040_v35  ;;  %v1295_v51 = vrot.slane %v4418_v36, 1 }
  0x84   : > { %v586_v58 = vmul.f32 0.0472, %v3096_v31  ;;  %v425_v15 = vmax.f32 %v371_v39, 0.0  ;;  %v426_v60 = vmax.f32 %v372_v40, 0.0  ;;  %v1296_v9 = vrot.slane %v4420_v37, 1 }
  0x85   : > { %v4554_v13 = vsel %vm639_vm1, %v778_v43, %v782_v33  ;;  %v4556_v20 = vpack.c.bf16 %v585_v44, %v584_v38  ;;  %v427_v24 = vmax.f32 %v373_v45, 0.0  ;;  %v266_v18 = vmul.f32 21.186441, %v212_v41 }
  0x86   : > { %5093 = vst [vmem:[#allocation7_spill] sm:$0xff] %v4554_v13  ;;  %3447 = vmatmul.mubr.msk.bf16.gmra.mrb[20].mxu1 %vm834_vm2, %v4554_v13  ;;  %v4561_v54 = vpack.c.bf16 %v586_v58, %v586_v58  ;;  %v479_v63 = vmin.f32 %v425_v15, 255.0  ;;  %v480_v25 = vmin.f32 %v426_v60, 255.0  ;;  %v4564_v27 = vsel %vm1276_vm3, %v1295_v51, %v1296_v9 }
  0x87   : > { %v785_v37 = vshrl.u32 %v4556_v20, 16  ;;  %v787_v22 = vshll.u32 %v4556_v20, 16  ;;  %v481_v28 = vmin.f32 %v427_v24, 255.0  ;;  %3605 = vmatmul.mubr.msk.bf16.gmra.mrb[8].mxu0 %vm834_vm2, %v4564_v27  ;;  %v267_v30 = vmul.f32 21.186441, %v213_v11 }
  0x88   : > { %v792_v33 = vshll.u32 %v4561_v54, 16  ;;  %v3097_v34 = vadd.f32 -64.0, %v479_v63  ;;  %v3098_v35 = vadd.f32 -64.0, %v480_v25  ;;  %v268_v31 = vmul.f32 21.186441, %v214_v53  ;;  %v215_v25 = vld [vmem:[%s4289_s9 + $0x168] sm:$0xff] }
  0x89   : > { %v789_v38 = vrot.slane %v787_v22, 1  ;;  %v3099_v39 = vadd.f32 -64.0, %v481_v28  ;;  %v4041_v40 = vround.rtne.f32 %v266_v18  ;;  %v4042_v41 = vround.rtne.f32 %v267_v30 }
  0x8a   : > { %v794_v43 = vrot.slane %v792_v33, 1  ;;  %v587_v44 = vmul.f32 0.0472, %v3097_v34  ;;  %v588_v45 = vmul.f32 0.0472, %v3098_v35  ;;  %v4043_v51 = vround.rtne.f32 %v268_v31  ;;  %v216_v33 = vld [vmem:[%s4289_s9 + $0x170] sm:$0xff] }
  0x8b   : > { %v790_v58 = vor.u32 %v789_v38, %v785_v37  ;;  %v589_v15 = vmul.f32 0.0472, %v3099_v39  ;;  %v374_v60 = vadd.f32 64.0, %v4041_v40  ;;  %v375_v9 = vadd.f32 64.0, %v4042_v41  ;;  %v217_v37 = vld [vmem:[%s4289_s9 + $0x178] sm:$0x3] }
  0x8c   : > { %v4571_v11 = vpack.c.bf16 %v588_v45, %v587_v44  ;;  %v376_v24 = vadd.f32 64.0, %v4043_v51  ;;  %v1298_v53 = vrot.slane %v4428_v14, 1  ;;  %v1299_v63 = vrot.slane %v4430_v16, 1 }
  0x8d   : > { %v4577_v18 = vsel %vm639_vm1, %v790_v58, %v794_v43  ;;  %v4579_v22 = vpack.c.bf16 %v589_v15, %v589_v15  ;;  %v428_v28 = vmax.f32 %v374_v60, 0.0  ;;  %v429_v30 = vmax.f32 %v375_v9, 0.0 }
  0x8e   : > { %5094 = vst [vmem:[#allocation8_spill] sm:$0xff] %v4577_v18  ;;  %3450 = vmatprep.mubr.msk.bf16.mxu1 %vm834_vm2, %v4577_v18  ;;  %v797_v34 = vshrl.u32 %v4571_v11, 16  ;;  %v799_v35 = vshll.u32 %v4571_v11, 16  ;;  %v430_v31 = vmax.f32 %v376_v24, 0.0  ;;  %v4588_v16 = vsel %vm1276_vm3, %v1298_v53, %v1299_v63 }
  0x8f   : > { %v804_v38 = vshll.u32 %v4579_v22, 16  ;;  %v482_v39 = vmin.f32 %v428_v28, 255.0  ;;  %v483_v40 = vmin.f32 %v429_v30, 255.0  ;;  %3608 = vmatprep.mubr.msk.bf16.mxu0 %vm834_vm2, %v4588_v16  ;;  %v269_v41 = vmul.f32 21.186441, %v215_v25 }
  0x90   : > { %v801_v43 = vrot.slane %v799_v35, 1  ;;  %v484_v44 = vmin.f32 %v430_v31, 255.0  ;;  %v270_v45 = vmul.f32 21.186441, %v216_v33  ;;  %v271_v51 = vmul.f32 21.186441, %v217_v37 }
  0x91   : > { %v806_v58 = vrot.slane %v804_v38, 1  ;;  %v3100_v15 = vadd.f32 -64.0, %v482_v39  ;;  %v3101_v60 = vadd.f32 -64.0, %v483_v40  ;;  %v4044_v9 = vround.rtne.f32 %v269_v41 }
  0x92   : > { %v802_v24 = vor.u32 %v801_v43, %v797_v34  ;;  %v3102_v3 = vadd.f32 -64.0, %v484_v44  ;;  %v4045_v53 = vround.rtne.f32 %v270_v45  ;;  %v4046_v63 = vround.rtne.f32 %v271_v51 }
  0x93   : > { %v590_v18 = vmul.f32 0.0472, %v3100_v15  ;;  %v591_v13 = vmul.f32 0.0472, %v3101_v60  ;;  %v377_v28 = vadd.f32 64.0, %v4044_v9  ;;  %v1301_v30 = vrot.slane %v4453_v1, 1 }
  0x94   : > { %v4595_v57 = vsel %vm639_vm1, %v802_v24, %v806_v58  ;;  %v592_v25 = vmul.f32 0.0472, %v3102_v3  ;;  %v378_v35 = vadd.f32 64.0, %v4045_v53  ;;  %v379_v33 = vadd.f32 64.0, %v4046_v63 }
  0x95   : > { %3451 = vmatmul.mubr.msk.bf16.gmra.mrb[24].mxu1 %vm834_vm2, %v4595_v57  ;;  %v4599_v37 = vpack.c.bf16 %v591_v13, %v590_v18  ;;  %v431_v34 = vmax.f32 %v377_v28, 0.0  ;;  %v1302_v31 = vrot.slane %v4464_v8, 1  ;;  %v1304_v38 = vrot.slane %v4475_v56, 1 }
  0x96   : > { %v4603_v39 = vpack.c.bf16 %v592_v25, %v592_v25  ;;  %v432_v40 = vmax.f32 %v378_v35, 0.0  ;;  %v433_v41 = vmax.f32 %v379_v33, 0.0  ;;  %v1305_v43 = vrot.slane %v4483_v6, 1 }
  0x97   : > { %v809_v3 = vshrl.u32 %v4599_v37, 16  ;;  %v811_v44 = vshll.u32 %v4599_v37, 16  ;;  %v485_v45 = vmin.f32 %v431_v34, 255.0  ;;  %v4609_v51 = vsel %vm1276_vm3, %v1301_v30, %v1302_v31  ;;  %v218_v31 = vld [vmem:[%s4289_s9 + $0x180] sm:$0xff] }
  0x98   : > { %v816_v13 = vshll.u32 %v4603_v39, 16  ;;  %v486_v18 = vmin.f32 %v432_v40, 255.0  ;;  %v487_v8 = vmin.f32 %v433_v41, 255.0  ;;  %3609 = vmatmul.mubr.msk.bf16.gmra.mrb[12].mxu0 %vm834_vm2, %v4609_v51  ;;  %v4615_v58 = vsel %vm1276_vm3, %v1304_v38, %v1305_v43  ;;  %v219_v38 = vld [vmem:[%s4289_s9 + $0x188] sm:$0xff] }
  0x99   : > { %v813_v6 = vrot.slane %v811_v44, 1  ;;  %v3103_v15 = vadd.f32 -64.0, %v485_v45  ;;  %3612 = vmatprep.mubr.msk.bf16.mxu0 %vm834_vm2, %v4615_v58  ;;  %v1307_v60 = vrot.slane %v4499_v17, 1  ;;  %v1308_v63 = vrot.slane %v4501_v49, 1 }
  0x9a   : > { %v818_v9 = vrot.slane %v816_v13, 1  ;;  %v3104_v24 = vadd.f32 -64.0, %v486_v18  ;;  %v3105_v53 = vadd.f32 -64.0, %v487_v8  ;;  %v1310_v25 = vrot.slane %v4535_v62, 1 }
  0x9b   : > { %v814_v28 = vor.u32 %v813_v6, %v809_v3  ;;  %v593_v30 = vmul.f32 0.0472, %v3103_v15  ;;  %v1311_v35 = vrot.slane %v4537_v2, 1  ;;  %v4629_v41 = vsel %vm1276_vm3, %v1307_v60, %v1308_v63  ;;  %v220_v2 = vld [vmem:[%s4289_s9 + $0x190] sm:$0x3] }
  0x9c   : > { %v594_v33 = vmul.f32 0.0472, %v3104_v24  ;;  %v595_v34 = vmul.f32 0.0472, %v3105_v53  ;;  %v272_v44 = vmul.f32 21.186441, %v218_v31 }
  0x9d   : > { %v4626_v40 = vsel %vm639_vm1, %v814_v28, %v818_v9  ;;  %v4636_v3 = vsel %vm1276_vm3, %v1310_v25, %v1311_v35  ;;  %v273_v45 = vmul.f32 21.186441, %v219_v38  ;;  %v1313_v6 = vrot.slane %v4556_v20, 1 }
  0x9e   : > { %5095 = vst [vmem:[#allocation9_spill] sm:$0xff] %v4626_v40  ;;  %3454 = vmatprep.mubr.msk.bf16.mxu1 %vm834_vm2, %v4626_v40  ;;  %v4633_v49 = vpack.c.bf16 %v594_v33, %v593_v30  ;;  %v633_v43 = vpack.c.bf16 %v595_v34, %v595_v34  ;;  %v1314_v15 = vrot.slane %v4561_v54, 1  ;;  %v1316_v60 = vrot.slane %v4571_v11, 1 }
  0x9f   : > { %v1317_v9 = vrot.slane %v4579_v22, 1  ;;  %v274_v24 = vmul.f32 21.186441, %v220_v2  ;;  %v4047_v28 = vround.rtne.f32 %v272_v44  ;;  %v4048_v30 = vround.rtne.f32 %v273_v45 }
  0xa0   : > { %v821_v13 = vshrl.u32 %v4633_v49, 16  ;;  %v823_v18 = vshll.u32 %v4633_v49, 16  ;;  %v828_v8 = vshll.u32 %v633_v43, 16  ;;  %3613 = vmatmul.mubr.msk.bf16.gmra.mrb[16].mxu0 %vm834_vm2, %v4629_v41  ;;  %v4650_v31 = vsel %vm1276_vm3, %v1313_v6, %v1314_v15 }
  0xa1   : > { %3616 = vmatprep.mubr.msk.bf16.mxu0 %vm834_vm2, %v4636_v3  ;;  %v4049_v25 = vround.rtne.f32 %v274_v24  ;;  %v380_v33 = vadd.f32 64.0, %v4047_v28  ;;  %v381_v34 = vadd.f32 64.0, %v4048_v30  ;;  %v4656_v54 = vsel %vm1276_vm3, %v1316_v60, %v1317_v9  ;;  %v4126_v30 = vld [vmem:[%s5077_s1 + $0x4] sm:$0x3] }
  0xa2   : > { %v825_v53 = vrot.slane %v823_v18, 1  ;;  %v830_v63 = vrot.slane %v828_v8, 1  ;;  %v1319_v8 = vrot.slane %v4599_v37, 1  ;;  %v1320_v6 = vrot.slane %v4603_v39, 1  ;;  %v3162_v39 = vld [vmem:[%s5077_s1 + $0x6] sm:$0x3] }
  0xa3   : > { %v382_v38 = vadd.f32 64.0, %v4049_v25  ;;  %v434_v22 = vmax.f32 %v380_v33, 0.0  ;;  %v435_v2 = vmax.f32 %v381_v34, 0.0  ;;  %v1322_v9 = vrot.slane %v4633_v49, 1 }
  0xa4   : > { %v826_v35 = vor.u32 %v825_v53, %v821_v13  ;;  %v1323_v24 = vrot.slane %v633_v43, 1  ;;  %v1376_v25 = vsel %vm883_vm0, %v4126_v30, 0  ;;  %v4674_v33 = vsel %vm1276_vm3, %v1319_v8, %v1320_v6 }
  0xa5   : > { %v436_v44 = vmax.f32 %v382_v38, 0.0  ;;  %v488_v45 = vmin.f32 %v434_v22, 255.0  ;;  %v489_v13 = vmin.f32 %v435_v2, 255.0 }
  0xa6   : > { %v4653_v40 = vsel %vm639_vm1, %v826_v35, %v830_v63  ;;  %v4684_v43 = vsel %vm1276_vm3, %v1322_v9, %v1323_v24  ;;  %v1277_v9 = vrot.slane %v4315_v5, 1  ;;  %v1278_v24 = vrot.slane %v4317_v7, 1 }
  0xa7   : > { %3455 = vmatmul.mubr.msk.bf16.gmra.mrb[28].mxu1 %vm834_vm2, %v4653_v40  ;;  %v490_v18 = vmin.f32 %v436_v44, 255.0  ;;  %v3106_v15 = vadd.f32 -64.0, %v488_v45  ;;  %v3107_v60 = vadd.f32 -64.0, %v489_v13  ;;  %v2408_v45 = vsel %vm883_vm0, %v4508_v59, 0  ;;  %v3247_v13 = vld [vmem:[%s5077_s1 + $0x10] sm:$0x3] }
  0xa8   : > { %3460 = vmatprep.mubr.msk.bf16.mxu1 %vm834_vm2, %v4315_v5  ;;  %3617 = vmatmul.mubr.msk.bf16.gmra.mrb[20].mxu0 %vm834_vm2, %v4650_v31  ;;  %v221_v59 = vld [vmem:[%s4289_s9 + $0x198] sm:$0xff] }
  0xa9   : > { %3620 = vmatprep.mubr.msk.bf16.mxu0 %vm834_vm2, %v4656_v54  ;;  %v3108_v53 = vadd.f32 -64.0, %v490_v18  ;;  %v596_v63 = vmul.f32 0.0472, %v3106_v15  ;;  %v597_v28 = vmul.f32 0.0472, %v3107_v60  ;;  %v222_v18 = vld [vmem:[%s4289_s9 + $0x1a0] sm:$0xff] }
  0xaa   : > { %v275_v8 = vmul.f32 21.186441, %v221_v59  ;;  %v276_v6 = vmul.f32 21.186441, %v222_v18  ;;  %v4127_v18 = vld [vmem:[%s5077_s1 + $0x8] sm:$0x3] }
  0xab   : > { %v598_v35 = vmul.f32 0.0472, %v3108_v53  ;;  %v4676_v34 = vpack.c.bf16 %v597_v28, %v596_v63  ;;  %v1279_v28 = vsel %vm1276_vm3, %v1277_v9, %v1278_v24 }
  0xac   : > { %v4050_v15 = vround.rtne.f32 %v275_v8  ;;  %v4051_v60 = vround.rtne.f32 %v276_v6 }
  0xad   : > { %v4686_v38 = vpack.c.bf16 %v598_v35, %v598_v35  ;;  %v1986_v22 = vrot.slane %v4676_v34, 1  ;;  %v1577_v35 = vsel %vm883_vm0, %v3162_v39, 0  ;;  %v1772_v9 = vshrl.u32 %v4676_v34, 16 }
  0xae   : > { %v383_v53 = vadd.f32 64.0, %v4050_v15  ;;  %v384_v63 = vadd.f32 64.0, %v4051_v60  ;;  %v1774_v15 = vshll.u32 %v4676_v34, 16 }
  0xaf   : > { %3461 = vmatmul.mubr.msk.bf16.vlgmr.msra.gmra.mrb[0].mxu1 %vm834_vm2, %v4323_v21  ;;  %v1987_v2 = vrot.slane %v4686_v38, 1 }
  0xb0   : > { %3493 = vmatpush3.bf16.msra.mxu1 %v1376_v25  ;;  %3464 = vmatprep.mubr.msk.bf16.mxu1 %vm834_vm2, %v4336_v50  ;;  %v437_v30 = vmax.f32 %v383_v53, 0.0  ;;  %v438_v25 = vmax.f32 %v384_v63, 0.0  ;;  %v1776_v24 = vrot.slane %v1774_v15, 1  ;;  %v1779_v53 = vshll.u32 %v4686_v38, 16  ;;  %v5099_v63 = vld [vmem:[#allocation9_spill] sm:$0xff] }
  0xb1   : > { %3621 = vmatmul.mubr.msk.bf16.gmra.mrb[24].mxu0 %vm834_vm2, %v4674_v33  ;;  %3991 = vmatprep.subr.msk.bf16.mxu1 %vm883_vm0, %v3162_v39  ;;  %v4698_v44 = vsel %vm1276_vm3, %v1986_v22, %v1987_v2  ;;  %v2614_v39 = vsel %vm883_vm0, %v3247_v13, 0  ;;  %v5100_v38 = vld [vmem:[#allocation5_spill] sm:$0xff] }
  0xb2   : > { %3624 = vmatprep.mubr.msk.bf16.mxu0 %vm834_vm2, %v4684_v43  ;;  %v491_v5 = vmin.f32 %v437_v30, 255.0  ;;  %v492_v7 = vmin.f32 %v438_v25, 255.0  ;;  %v1777_v25 = vor.u32 %v1776_v24, %v1772_v9 }
  0xb4   : > { %v3109_v22 = vadd.f32 -64.0, %v491_v5  ;;  %v3110_v2 = vadd.f32 -64.0, %v492_v7  ;;  %v1781_v5 = vrot.slane %v1779_v53, 1 }
  0xb6   : > { %v600_v59 = vmul.f32 0.0472, %v3110_v2 }
  0xb7   : > { %3465 = vmatmul.mubr.msk.bf16.gmra.mrb[4].mxu1 %vm834_vm2, %v4364_v42 }
  0xb8   : > { %3468 = vmatprep.mubr.msk.bf16.mxu1 %vm834_vm2, %v4376_v12 }
  0xb9   : > { %3625 = vmatmul.mubr.msk.bf16.gmra.mrb[28].mxu0 %vm834_vm2, %v4698_v44 }
  0xba   : > { %3630 = vmatprep.mubr.msk.bf16.mxu0 %vm834_vm2, %v4336_v50 }
  0xbf   : > { %3469 = vmatmul.mubr.msk.bf16.gmra.mrb[8].mxu1 %vm834_vm2, %v4393_v48 }
  0xc0   : > { %3472 = vmatprep.mubr.msk.bf16.mxu1 %vm834_vm2, %v4418_v36 }
  0xc1   : > { %3631 = vmatmul.mubr.msk.bf16.vlgmr.msra.gmra.mrb[0].mxu0 %vm834_vm2, %v4364_v42 }
  0xc2   : > { %3663 = vmatpush3.bf16.msra.mxu0 %v2408_v45  ;;  %3634 = vmatprep.mubr.msk.bf16.mxu0 %vm834_vm2, %v4376_v12  ;;  %v599_v45 = vmul.f32 0.0472, %v3109_v22 }
  0xc3   : > { %3997 = vmatprep.subr.msk.bf16.mxu0 %vm883_vm0, %v3247_v13 }
  0xc7   : > { %3473 = vmatmul.mubr.msk.bf16.gmra.mrb[12].mxu1 %vm834_vm2, %v4428_v14 }
  0xc8   : > { %3476 = vmatprep.mubr.msk.bf16.mxu1 %vm834_vm2, %v4453_v1 }
  0xc9   : > { %3635 = vmatmul.mubr.msk.bf16.gmra.mrb[4].mxu0 %vm834_vm2, %v4393_v48 }
  0xca   : > { %3638 = vmatprep.mubr.msk.bf16.mxu0 %vm834_vm2, %v4418_v36 }
  0xcf   : > { %3477 = vmatmul.mubr.msk.bf16.gmra.mrb[16].mxu1 %vm834_vm2, %v4475_v56 }
  0xd0   : > { %3480 = vmatprep.mubr.msk.bf16.mxu1 %vm834_vm2, %v4499_v17 }
  0xd1   : > { %3639 = vmatmul.mubr.msk.bf16.gmra.mrb[8].mxu0 %vm834_vm2, %v4428_v14 }
  0xd2   : > { %3642 = vmatprep.mubr.msk.bf16.mxu0 %vm834_vm2, %v4453_v1 }
  0xd7   : > { %3481 = vmatmul.mubr.msk.bf16.gmra.mrb[20].mxu1 %vm834_vm2, %v4535_v62 }
  0xd8   : > { %3484 = vmatprep.mubr.msk.bf16.mxu1 %vm834_vm2, %v4556_v20 }
  0xd9   : > { %3643 = vmatmul.mubr.msk.bf16.gmra.mrb[12].mxu0 %vm834_vm2, %v4475_v56 }
  0xda   : > { %3646 = vmatprep.mubr.msk.bf16.mxu0 %vm834_vm2, %v4499_v17 }
  0xdf   : > { %3485 = vmatmul.mubr.msk.bf16.gmra.mrb[24].mxu1 %vm834_vm2, %v4571_v11 }
  0xe0   : > { %3488 = vmatprep.mubr.msk.bf16.mxu1 %vm834_vm2, %v4599_v37 }
  0xe1   : > { %3647 = vmatmul.mubr.msk.bf16.gmra.mrb[16].mxu0 %vm834_vm2, %v4535_v62 }
  0xe2   : > { %3650 = vmatprep.mubr.msk.bf16.mxu0 %vm834_vm2, %v4556_v20 }
  0xe7   : > { %3489 = vmatmul.mubr.msk.bf16.gmra.mrb[28].mxu1 %vm834_vm2, %v4633_v49 }
  0xe8   : > { %3494 = vmatprep.mubr.msk.bf16.mxu1 %vm834_vm2, %v1279_v28 }
  0xe9   : > { %3651 = vmatmul.mubr.msk.bf16.gmra.mrb[20].mxu0 %vm834_vm2, %v4571_v11 }
  0xea   : > { %3654 = vmatprep.mubr.msk.bf16.mxu0 %vm834_vm2, %v4599_v37 }
  0xef   : > { %3495 = vmatmul.mubr.msk.bf16.vlgmr.msra.gmra.mrb[0].mxu1 %vm834_vm2, %v4437_v26  ;;  %v4779_v26 = vpack.c.bf16 %v600_v59, %v599_v45 }
  0xf0   : > { %3527 = vmatpush3.bf16.msra.mxu1 %v1577_v35  ;;  %3498 = vmatprep.mubr.msk.bf16.mxu1 %vm834_vm2, %v4458_v4 }
  0xf1   : > { %3655 = vmatmul.mubr.msk.bf16.gmra.mrb[24].mxu0 %vm834_vm2, %v4633_v49  ;;  %3993 = vmatprep.subr.msk.bf16.mxu1 %vm883_vm0, %v4127_v18  ;;  %v2393_v30 = vshll.u32 %v4779_v26, 16  ;;  %v2391_v7 = vshrl.u32 %v4779_v26, 16 }
  0xf2   : > { %3658 = vmatprep.mubr.msk.bf16.mxu0 %vm834_vm2, %v4676_v34 }
  0xf3   : > { %v2395_v35 = vrot.slane %v2393_v30, 1 }
  0xf5   : > { %v2396_v2 = vor.u32 %v2395_v35, %v2391_v7 }
  0xf7   : > { %3499 = vmatmul.mubr.msk.bf16.gmra.mrb[4].mxu1 %vm834_vm2, %v4486_v46 }
  0xf8   : > { %3502 = vmatprep.mubr.msk.bf16.mxu1 %vm834_vm2, %v4515_v61 }
  0xf9   : > { %3659 = vmatmul.mubr.msk.bf16.gmra.mrb[28].mxu0 %vm834_vm2, %v4779_v26 }
  0xfa   : > { %3664 = vmatprep.mubr.msk.bf16.mxu0 %vm834_vm2, %v4356_v29  ;;  %v223_v29 = vld [vmem:[%s4289_s9 + $0x1a8] sm:$0x3]  ;;  %s3056_s9 = sshll.u32 %s161_s8, 8 }
  0xfb   : > { %v277_v13 = vmul.f32 21.186441, %v223_v29  ;;  %s4955_s10 = scalar_lea.vmem [#allocation2], %s3056_s9 }
  0xfc   : > { %s2990_s17 = sshll.u32 %s4955_s10, 4  ;;  %s5028_s17 = int_to_ptr.vmem [resolvable:$true] %s2990_s17 }
  0xfd   : > { %s4128_s25 = scalar_lea.vmem %s5028_s17, 4096  ;;  %p4135_p0 = scmp.lt.s32.totalorder %s5028_s17, %s4133_s27 }
  0xfe   : > { %p4129_p11 = scmp.ne.s32.totalorder %s5028_s17, %s4128_s25  ;;  %p4136_p1 = scmp.lt.s32.totalorder %s4134_s28, %s4128_s25 }
  0xff   : > { %3503 = vmatmul.mubr.msk.bf16.gmra.mrb[8].mxu1 %vm834_vm2, %v4542_v19 }
 0x100   : > { %3506 = vmatprep.mubr.msk.bf16.mxu1 %vm834_vm2, %v4564_v27  ;;  %p4130_p12 = pnand %p4129_p11, %p4253_p5  ;;  %p4137_p2 = por %p4136_p1, %p4135_p0 }
 0x101   : > { %3665 = vmatmul.mubr.msk.bf16.vlgmr.msra.gmra.mrb[0].mxu0 %vm834_vm2, %v4381_v23  ;;  %v4052_v23 = vround.rtne.f32 %v277_v13 }
 0x102   : > { %3697 = vmatpush3.bf16.msra.mxu0 %v2614_v39  ;;  %3668 = vmatprep.mubr.msk.bf16.mxu0 %vm834_vm2, %v4396_v52  ;;  %p4131_p13 = pneg %p4130_p12 }
 0x103   : > { %v385_v52 = vadd.f32 64.0, %v4052_v23 }
 0x104   : > { %p4138_p3 = pnand %p4137_p2, %p4131_p13 }
 0x107   : > { %3507 = vmatmul.mubr.msk.bf16.gmra.mrb[12].mxu1 %vm834_vm2, %v4588_v16 }
 0x108   : > { %3510 = vmatprep.mubr.msk.bf16.mxu1 %vm834_vm2, %v4609_v51 }
 0x109   : > { %3669 = vmatmul.mubr.msk.bf16.gmra.mrb[4].mxu0 %vm834_vm2, %v4412_v32  ;;  %v5096_v32 = vld [vmem:[#allocation6_spill] sm:$0xff] }
 0x10a   : > { %3672 = vmatprep.mubr.msk.bf16.mxu0 %vm834_vm2, %v4434_v10  ;;  %v439_v10 = vmax.f32 %v385_v52, 0.0 }
 0x10c   : > { %v493_v8 = vmin.f32 %v439_v10, 255.0 }
 0x10e   : > { %v3111_v6 = vadd.f32 -64.0, %v493_v8 }
 0x10f   : > { %3511 = vmatmul.mubr.msk.bf16.gmra.mrb[16].mxu1 %vm834_vm2, %v4615_v58 }
 0x110   : > { %3514 = vmatprep.mubr.msk.bf16.mxu1 %vm834_vm2, %v4629_v41  ;;  %v601_v60 = vmul.f32 0.0472, %v3111_v6 }
 0x111   : > { %3673 = vmatmul.mubr.msk.bf16.gmra.mrb[8].mxu0 %vm834_vm2, %v4451_v0  ;;  %v5097_v0 = vld [vmem:[#allocation7_spill] sm:$0xff] }
 0x112   : > { %3676 = vmatprep.mubr.msk.bf16.mxu0 %vm834_vm2, %v4473_v55  ;;  %v5098_v55 = vld [vmem:[#allocation8_spill] sm:$0xff]  ;;  %v637_v28 = vpack.c.bf16 %v601_v60, %v601_v60 }
 0x114   : > { %v2398_v22 = vshll.u32 %v637_v28, 16 }
 0x116   : > { %v2400_v45 = vrot.slane %v2398_v22, 1 }
 0x117   : > { %3515 = vmatmul.mubr.msk.bf16.gmra.mrb[20].mxu1 %vm834_vm2, %v4636_v3 }
 0x118   : > { %3518 = vmatprep.mubr.msk.bf16.mxu1 %vm834_vm2, %v4650_v31  ;;  %v2401_v59 = vsel %vm639_vm1, %v2396_v2, %v2400_v45 }
 0x119   : > { %3677 = vmatmul.mubr.msk.bf16.gmra.mrb[12].mxu0 %vm834_vm2, %v4497_v47 }
 0x11a   : > { %3680 = vmatprep.mubr.msk.bf16.mxu0 %vm834_vm2, %v5096_v32 }
 0x11f   : > { %3519 = vmatmul.mubr.msk.bf16.gmra.mrb[24].mxu1 %vm834_vm2, %v4656_v54 }
 0x120   : > { %3522 = vmatprep.mubr.msk.bf16.mxu1 %vm834_vm2, %v4674_v33 }
 0x121   : > { %3681 = vmatmul.mubr.msk.bf16.gmra.mrb[16].mxu0 %vm834_vm2, %v5097_v0 }
 0x122   : > { %3684 = vmatprep.mubr.msk.bf16.mxu0 %vm834_vm2, %v5098_v55 }
 0x127   : > { %3523 = vmatmul.mubr.msk.bf16.gmra.mrb[28].mxu1 %vm834_vm2, %v4684_v43 }
 0x128   : > { %3528 = vmatprep.mubr.msk.bf16.mxu1 %vm834_vm2, %v4323_v21  ;;  %v1782_v21 = vsel %vm639_vm1, %v1777_v25, %v1781_v5 }
 0x129   : > { %3685 = vmatmul.mubr.msk.bf16.gmra.mrb[20].mxu0 %vm834_vm2, %v4595_v57 }
 0x12a   : > { %3688 = vmatprep.mubr.msk.bf16.mxu0 %vm834_vm2, %v5099_v63 }
 0x12f   : > { %3529 = vmatmul.mubr.msk.bf16.vlgmr.msra.gmra.mrb[0].mxu1 %vm834_vm2, %v4336_v50  ;;  %v2605_v50 = vrot.slane %v4779_v26, 1 }
 0x130   : > { %3731 = vmatpush3.bf16.msra.mxu1 %v5100_v38  ;;  %3532 = vmatprep.mubr.msk.bf16.mxu1 %vm834_vm2, %v4364_v42  ;;  %v2606_v42 = vrot.slane %v637_v28, 1 }
 0x131   : > { %3689 = vmatmul.mubr.msk.bf16.gmra.mrb[24].mxu0 %vm834_vm2, %v4653_v40 }
 0x132   : > { %3692 = vmatprep.mubr.msk.bf16.mxu0 %vm834_vm2, %v1782_v21 }
 0x137   : > { %3533 = vmatmul.mubr.msk.bf16.gmra.mrb[4].mxu1 %vm834_vm2, %v4376_v12  ;;  %v2607_v12 = vsel %vm1276_vm3, %v2605_v50, %v2606_v42 }
 0x138   : > { %3536 = vmatprep.mubr.msk.bf16.mxu1 %vm834_vm2, %v4393_v48 }
 0x139   : > { %3693 = vmatmul.mubr.msk.bf16.gmra.mrb[28].mxu0 %vm834_vm2, %v2401_v59 }
 0x13a   : > { %3698 = vmatprep.mubr.msk.bf16.mxu0 %vm834_vm2, %v4458_v4 }
 0x13f   : > { %3537 = vmatmul.mubr.msk.bf16.gmra.mrb[8].mxu1 %vm834_vm2, %v4418_v36 }
 0x140   : > { %3540 = vmatprep.mubr.msk.bf16.mxu1 %vm834_vm2, %v4428_v14 }
 0x141   : > { %3699 = vmatmul.mubr.msk.bf16.vlgmr.msra.gmra.mrb[0].mxu0 %vm834_vm2, %v4486_v46 }
 0x142   : > { %3702 = vmatprep.mubr.msk.bf16.mxu0 %vm834_vm2, %v4515_v61 }
 0x147   : > { %3541 = vmatmul.mubr.msk.bf16.gmra.mrb[12].mxu1 %vm834_vm2, %v4453_v1 }
 0x148   : > { %3544 = vmatprep.mubr.msk.bf16.mxu1 %vm834_vm2, %v4475_v56 }
 0x149   : > { %3703 = vmatmul.mubr.msk.bf16.gmra.mrb[4].mxu0 %vm834_vm2, %v4542_v19  ;;  %v4936_v19 = vld [vmem:[%s5078_s2] ss:$0 sm:$0xff] }
 0x14a   : > { %3706 = vmatprep.mubr.msk.bf16.mxu0 %vm834_vm2, %v4564_v27 }
 0x14f   : > { %3545 = vmatmul.mubr.msk.bf16.gmra.mrb[16].mxu1 %vm834_vm2, %v4499_v17 }
 0x150   : > { %3548 = vmatprep.mubr.msk.bf16.mxu1 %vm834_vm2, %v4535_v62 }
 0x151   : > { %3707 = vmatmul.mubr.msk.bf16.gmra.mrb[8].mxu0 %vm834_vm2, %v4588_v16 }
 0x152   : > { %3710 = vmatprep.mubr.msk.bf16.mxu0 %vm834_vm2, %v4609_v51 }
 0x157   : > { %3549 = vmatmul.mubr.msk.bf16.gmra.mrb[20].mxu1 %vm834_vm2, %v4556_v20 }
 0x158   : > { %3552 = vmatprep.mubr.msk.bf16.mxu1 %vm834_vm2, %v4571_v11 }
 0x159   : > { %3711 = vmatmul.mubr.msk.bf16.gmra.mrb[12].mxu0 %vm834_vm2, %v4615_v58 }
 0x15a   : > { %3714 = vmatprep.mubr.msk.bf16.mxu0 %vm834_vm2, %v4629_v41 }
 0x15f   : > { %3553 = vmatmul.mubr.msk.bf16.gmra.mrb[24].mxu1 %vm834_vm2, %v4599_v37 }
 0x160   : > { %3556 = vmatprep.mubr.msk.bf16.mxu1 %vm834_vm2, %v4633_v49 }
 0x161   : > { %3715 = vmatmul.mubr.msk.bf16.gmra.mrb[16].mxu0 %vm834_vm2, %v4636_v3 }
 0x162   : > { %3718 = vmatprep.mubr.msk.bf16.mxu0 %vm834_vm2, %v4650_v31 }
 0x167   : > { %3557 = vmatmul.mubr.msk.bf16.gmra.mrb[28].mxu1 %vm834_vm2, %v4676_v34 }
 0x168   : > { %3578 = vmatprep.mubr.msk.bf16.mxu1 %vm834_vm2, %v4497_v47 }
 0x169   : > { %3719 = vmatmul.mubr.msk.bf16.gmra.mrb[20].mxu0 %vm834_vm2, %v4656_v54 }
 0x16a   : > { %3722 = vmatprep.mubr.msk.bf16.mxu0 %vm834_vm2, %v4674_v33 }
 0x16f   : > { %3579 = vmatmul.mubr.msk.bf16.vlgmr.msra.gmra.mrb[16].mxu1 %vm834_vm2, %v5096_v32 }
 0x170   : > { %3582 = vmatprep.mubr.msk.bf16.mxu1 %vm834_vm2, %v5097_v0 }
 0x171   : > { %3723 = vmatmul.mubr.msk.bf16.gmra.mrb[24].mxu0 %vm834_vm2, %v4684_v43 }
 0x172   : > { %3726 = vmatprep.mubr.msk.bf16.mxu0 %vm834_vm2, %v4698_v44 }
 0x177   : > { %3583 = vmatmul.mubr.msk.bf16.gmra.mrb[20].mxu1 %vm834_vm2, %v5098_v55 }
 0x178   : > { %3586 = vmatprep.mubr.msk.bf16.mxu1 %vm834_vm2, %v4595_v57 }
 0x179   : > { %3727 = vmatmul.mubr.msk.bf16.gmra.mrb[28].mxu0 %vm834_vm2, %v2607_v12 }
 0x17f   : > { %3587 = vmatmul.mubr.msk.bf16.gmra.mrb[24].mxu1 %vm834_vm2, %v5099_v63 }
 0x180   : > { %3590 = vmatprep.mubr.msk.bf16.mxu1 %vm834_vm2, %v4653_v40 }
 0x187   : > { %3591 = vmatmul.mubr.msk.bf16.gmra.mrb[28].mxu1 %vm834_vm2, %v1782_v21 }
 0x202   : > { %v3530_v48 = vpop.f32.mrb[0].mxu1 }
 0x203   : > { %v1613_v36 = vpop.f32.mrb[1].mxu1 }
 0x204   : > { %v3531_v14 = vpop.f32.mrb[2].mxu1 }
 0x205   : > { %v1616_v1 = vpop.f32.mrb[3].mxu1 }
 0x20a   : > { %v3534_v4 = vpop.f32.mrb[4].mxu1 }
 0x20b   : > { %v1629_v56 = vpop.f32.mrb[5].mxu1 }
 0x20c   : > { %v3535_v46 = vpop.f32.mrb[6].mxu1 }
 0x20d   : > { %v1632_v47 = vpop.f32.mrb[7].mxu1 }
 0x212   : > { %v3538_v17 = vpop.f32.mrb[8].mxu1 }
 0x213   : > { %v4929_v61 = vpop.f32.mrb[9].mxu1 }
 0x214   : > { %v4931_v57 = vpop.f32.mrb[10].mxu1  ;;  %v3700_v62 = vpop.f32.mrb[0].mxu0 }
 0x215   : > { %v4938_v20 = vpop.f32.mrb[11].mxu1  ;;  %v3732_v27 = vadd.f32 %v3700_v62, %v3530_v48  ;;  %v2650_v11 = vpop.f32.mrb[1].mxu0 }
 0x216   : > { %v3733_v16 = vadd.f32 %v2650_v11, %v1613_v36  ;;  %v3701_v37 = vpop.f32.mrb[2].mxu0 }
 0x217   : > { %v2818_v51 = vadd.f32 %v3732_v27, %v4936_v19  ;;  %v3734_v58 = vadd.f32 %v3701_v37, %v3531_v14  ;;  %v2653_v40 = vpop.f32.mrb[3].mxu0 }
 0x218   : > { %v2816_v41 = vadd.f32 %v3733_v16, %v4936_v19  ;;  %v3735_v49 = vadd.f32 %v2653_v40, %v1616_v1 }
 0x219   : > { %v4055_v3 = vround.rtne.f32 %v2818_v51  ;;  %v2819_v31 = vadd.f32 %v3734_v58, %v4936_v19 }
 0x21a   : > { %v4946_v54 = vpop.f32.mrb[12].mxu1  ;;  %v4053_v33 = vround.rtne.f32 %v2816_v41  ;;  %v2817_v34 = vadd.f32 %v3735_v49, %v4936_v19 }
 0x21b   : > { %v4949_v43 = vpop.f32.mrb[13].mxu1  ;;  %v2882_v44 = vmax.f32 %v4055_v3, 0.0  ;;  %v4056_v18 = vround.rtne.f32 %v2819_v31 }
 0x21c   : > { %v4951_v26 = vpop.f32.mrb[14].mxu1  ;;  %v2880_v39 = vmax.f32 %v4053_v33, 0.0  ;;  %v4054_v29 = vround.rtne.f32 %v2817_v34  ;;  %v3704_v13 = vpop.f32.mrb[4].mxu0 }
 0x21d   : > { %v4953_v23 = vpop.f32.mrb[15].mxu1  ;;  %v2914_v52 = vmin.f32 %v2882_v44, 255.0  ;;  %v2883_v32 = vmax.f32 %v4056_v18, 0.0  ;;  %v3736_v10 = vadd.f32 %v3704_v13, %v3534_v4  ;;  %v2666_v8 = vpop.f32.mrb[5].mxu0 }
 0x21e   : > { %v2912_v0 = vmin.f32 %v2880_v39, 255.0  ;;  %v2881_v55 = vmax.f32 %v4054_v29, 0.0  ;;  %v3737_v6 = vadd.f32 %v2666_v8, %v1629_v56  ;;  %v3705_v15 = vpop.f32.mrb[6].mxu0 }
 0x21f   : > { %2946 = vst [vmem:[%s4955_s10 + $0x10] sm:$0xff] %v2914_v52  ;;  %v2915_v60 = vmin.f32 %v2883_v32, 255.0  ;;  %v2822_v9 = vadd.f32 %v3736_v10, %v4936_v19  ;;  %v3738_v24 = vadd.f32 %v3705_v15, %v3535_v46  ;;  %v2669_v53 = vpop.f32.mrb[7].mxu0 }
 0x220   : > { %2944 = vst [vmem:[%s4955_s10] sm:$0xff] %v2912_v0  ;;  %v2913_v63 = vmin.f32 %v2881_v55, 255.0  ;;  %v2820_v28 = vadd.f32 %v3737_v6, %v4936_v19  ;;  %v3739_v30 = vadd.f32 %v2669_v53, %v1632_v47 }
 0x221   : > { %2947 = vst [vmem:[%s4955_s10 + $0x18] sm:$0xff] %v2915_v60  ;;  %v4059_v25 = vround.rtne.f32 %v2822_v9  ;;  %v2823_v5 = vadd.f32 %v3738_v24, %v4936_v19 }
 0x222   : > { %2945 = vst [vmem:[%s4955_s10 + $0x8] sm:$0xff] %v2913_v63  ;;  %v4057_v7 = vround.rtne.f32 %v2820_v28  ;;  %v2821_v35 = vadd.f32 %v3739_v30, %v4936_v19 }
 0x223   : > { %v2886_v22 = vmax.f32 %v4059_v25, 0.0  ;;  %v4060_v21 = vround.rtne.f32 %v2823_v5 }
 0x224   : > { %v2884_v38 = vmax.f32 %v4057_v7, 0.0  ;;  %v4058_v2 = vround.rtne.f32 %v2821_v35  ;;  %v3708_v45 = vpop.f32.mrb[8].mxu0 }
 0x225   : > { %v2918_v59 = vmin.f32 %v2886_v22, 255.0  ;;  %v2887_v50 = vmax.f32 %v4060_v21, 0.0  ;;  %v3740_v42 = vadd.f32 %v3708_v45, %v3538_v17  ;;  %v2682_v12 = vpop.f32.mrb[9].mxu0 }
 0x226   : > { %v2916_v48 = vmin.f32 %v2884_v38, 255.0  ;;  %v2885_v36 = vmax.f32 %v4058_v2, 0.0  ;;  %v3741_v14 = vadd.f32 %v2682_v12, %v4929_v61  ;;  %v3709_v1 = vpop.f32.mrb[10].mxu0 }
 0x227   : > { %2950 = vst [vmem:[%s4955_s10 + $0x30] sm:$0xff] %v2918_v59  ;;  %v2919_v4 = vmin.f32 %v2887_v50, 255.0  ;;  %v2826_v56 = vadd.f32 %v3740_v42, %v4936_v19  ;;  %v3742_v46 = vadd.f32 %v3709_v1, %v4931_v57  ;;  %v2685_v47 = vpop.f32.mrb[11].mxu0 }
 0x228   : > { %2948 = vst [vmem:[%s4955_s10 + $0x20] sm:$0xff] %v2916_v48  ;;  %v2917_v62 = vmin.f32 %v2885_v36, 255.0  ;;  %v2824_v27 = vadd.f32 %v3741_v14, %v4936_v19  ;;  %v3743_v17 = vadd.f32 %v2685_v47, %v4938_v20 }
 0x229   : > { %2951 = vst [vmem:[%s4955_s10 + $0x38] sm:$0xff] %v2919_v4  ;;  %v4063_v11 = vround.rtne.f32 %v2826_v56  ;;  %v2827_v16 = vadd.f32 %v3742_v46, %v4936_v19 }
 0x22a   : > { %2949 = vst [vmem:[%s4955_s10 + $0x28] sm:$0xff] %v2917_v62  ;;  %v4061_v61 = vround.rtne.f32 %v2824_v27  ;;  %v2825_v37 = vadd.f32 %v3743_v17, %v4936_v19 }
 0x22b   : > { %v2890_v51 = vmax.f32 %v4063_v11, 0.0  ;;  %v4064_v58 = vround.rtne.f32 %v2827_v16 }
 0x22c   : > { %v2888_v40 = vmax.f32 %v4061_v61, 0.0  ;;  %v4062_v57 = vround.rtne.f32 %v2825_v37  ;;  %v3712_v41 = vpop.f32.mrb[12].mxu0 }
 0x22d   : > { %v2922_v49 = vmin.f32 %v2890_v51, 255.0  ;;  %v2891_v3 = vmax.f32 %v4064_v58, 0.0  ;;  %v3744_v20 = vadd.f32 %v3712_v41, %v4946_v54  ;;  %v2698_v31 = vpop.f32.mrb[13].mxu0 }
 0x22e   : > { %v2920_v33 = vmin.f32 %v2888_v40, 255.0  ;;  %v2889_v34 = vmax.f32 %v4062_v57, 0.0  ;;  %v3745_v44 = vadd.f32 %v2698_v31, %v4949_v43  ;;  %v3713_v18 = vpop.f32.mrb[14].mxu0 }
 0x22f   : > { %2954 = vst [vmem:[%s4955_s10 + $0x50] sm:$0xff] %v2922_v49  ;;  %v2923_v39 = vmin.f32 %v2891_v3, 255.0  ;;  %v2830_v29 = vadd.f32 %v3744_v20, %v4936_v19  ;;  %v3746_v13 = vadd.f32 %v3713_v18, %v4951_v26  ;;  %v2701_v52 = vpop.f32.mrb[15].mxu0 }
 0x230   : > { %2952 = vst [vmem:[%s4955_s10 + $0x40] sm:$0xff] %v2920_v33  ;;  %v2921_v32 = vmin.f32 %v2889_v34, 255.0  ;;  %v2828_v10 = vadd.f32 %v3745_v44, %v4936_v19  ;;  %v3747_v54 = vadd.f32 %v2701_v52, %v4953_v23 }
 0x231   : > { %2955 = vst [vmem:[%s4955_s10 + $0x58] sm:$0xff] %v2923_v39  ;;  %v4067_v8 = vround.rtne.f32 %v2830_v29  ;;  %v2831_v0 = vadd.f32 %v3746_v13, %v4936_v19 }
 0x232   : > { %2953 = vst [vmem:[%s4955_s10 + $0x48] sm:$0xff] %v2921_v32  ;;  %v4065_v43 = vround.rtne.f32 %v2828_v10  ;;  %v2829_v55 = vadd.f32 %v3747_v54, %v4936_v19 }
 0x233   : > { %v2894_v6 = vmax.f32 %v4067_v8, 0.0  ;;  %v4068_v26 = vround.rtne.f32 %v2831_v0 }
 0x234   : > { %v2892_v15 = vmax.f32 %v4065_v43, 0.0  ;;  %v4066_v60 = vround.rtne.f32 %v2829_v55  ;;  %v3716_v9 = vpop.f32.mrb[16].mxu0 }
 0x235   : > { %v2926_v24 = vmin.f32 %v2894_v6, 255.0  ;;  %v2895_v53 = vmax.f32 %v4068_v26, 0.0  ;;  %v2714_v23 = vpop.f32.mrb[17].mxu0 }
 0x236   : > { %v2924_v63 = vmin.f32 %v2892_v15, 255.0  ;;  %v2893_v28 = vmax.f32 %v4066_v60, 0.0  ;;  %v3717_v30 = vpop.f32.mrb[18].mxu0 }
 0x237   : > { %2958 = vst [vmem:[%s4955_s10 + $0x70] sm:$0xff] %v2926_v24  ;;  %v2927_v25 = vmin.f32 %v2895_v53, 255.0  ;;  %v2717_v5 = vpop.f32.mrb[19].mxu0 }
 0x238   : > { %2956 = vst [vmem:[%s4955_s10 + $0x60] sm:$0xff] %v2924_v63  ;;  %v2925_v7 = vmin.f32 %v2893_v28, 255.0 }
 0x239   : > { %2959 = vst [vmem:[%s4955_s10 + $0x78] sm:$0xff] %v2927_v25 }
 0x23a   : > { %2957 = vst [vmem:[%s4955_s10 + $0x68] sm:$0xff] %v2925_v7 }
 0x23c   : > { %v3720_v35 = vpop.f32.mrb[20].mxu0 }
 0x23d   : > { %v2730_v22 = vpop.f32.mrb[21].mxu0 }
 0x23e   : > { %v3721_v21 = vpop.f32.mrb[22].mxu0 }
 0x23f   : > { %v2733_v38 = vpop.f32.mrb[23].mxu0 }
 0x242   : > { %v3580_v2 = vpop.f32.mrb[16].mxu1 }
 0x243   : > { %v3748_v45 = vadd.f32 %v3716_v9, %v3580_v2  ;;  %v1889_v59 = vpop.f32.mrb[17].mxu1 }
 0x244   : > { %v3749_v50 = vadd.f32 %v2714_v23, %v1889_v59  ;;  %v3581_v42 = vpop.f32.mrb[18].mxu1  ;;  %v3724_v12 = vpop.f32.mrb[24].mxu0 }
 0x245   : > { %v2834_v48 = vadd.f32 %v3748_v45, %v4936_v19  ;;  %v3750_v36 = vadd.f32 %v3717_v30, %v3581_v42  ;;  %v1892_v14 = vpop.f32.mrb[19].mxu1  ;;  %v2746_v1 = vpop.f32.mrb[25].mxu0 }
 0x246   : > { %v2832_v4 = vadd.f32 %v3749_v50, %v4936_v19  ;;  %v3751_v56 = vadd.f32 %v2717_v5, %v1892_v14  ;;  %v3725_v46 = vpop.f32.mrb[26].mxu0 }
 0x247   : > { %v4071_v47 = vround.rtne.f32 %v2834_v48  ;;  %v2835_v62 = vadd.f32 %v3750_v36, %v4936_v19  ;;  %v2749_v27 = vpop.f32.mrb[27].mxu0 }
 0x248   : > { %v4069_v17 = vround.rtne.f32 %v2832_v4  ;;  %v2833_v11 = vadd.f32 %v3751_v56, %v4936_v19 }
 0x249   : > { %v2898_v16 = vmax.f32 %v4071_v47, 0.0  ;;  %v4072_v61 = vround.rtne.f32 %v2835_v62 }
 0x24a   : > { %v2896_v37 = vmax.f32 %v4069_v17, 0.0  ;;  %v4070_v51 = vround.rtne.f32 %v2833_v11  ;;  %v3584_v58 = vpop.f32.mrb[20].mxu1 }
 0x24b   : > { %v2930_v40 = vmin.f32 %v2898_v16, 255.0  ;;  %v2899_v57 = vmax.f32 %v4072_v61, 0.0  ;;  %v3752_v41 = vadd.f32 %v3720_v35, %v3584_v58  ;;  %v1905_v49 = vpop.f32.mrb[21].mxu1 }
 0x24c   : > { %v2928_v3 = vmin.f32 %v2896_v37, 255.0  ;;  %v2897_v20 = vmax.f32 %v4070_v51, 0.0  ;;  %v3753_v31 = vadd.f32 %v2730_v22, %v1905_v49  ;;  %v3585_v33 = vpop.f32.mrb[22].mxu1  ;;  %v3728_v34 = vpop.f32.mrb[28].mxu0 }
 0x24d   : > { %2962 = vst [vmem:[%s4955_s10 + $0x90] sm:$0xff] %v2930_v40  ;;  %v2931_v44 = vmin.f32 %v2899_v57, 255.0  ;;  %v2838_v18 = vadd.f32 %v3752_v41, %v4936_v19  ;;  %v3754_v39 = vadd.f32 %v3721_v21, %v3585_v33  ;;  %v1908_v29 = vpop.f32.mrb[23].mxu1  ;;  %v2762_v13 = vpop.f32.mrb[29].mxu0 }
 0x24e   : > { %2960 = vst [vmem:[%s4955_s10 + $0x80] sm:$0xff] %v2928_v3  ;;  %v2929_v52 = vmin.f32 %v2897_v20, 255.0  ;;  %v2836_v32 = vadd.f32 %v3753_v31, %v4936_v19  ;;  %v3755_v10 = vadd.f32 %v2733_v38, %v1908_v29  ;;  %v3729_v54 = vpop.f32.mrb[30].mxu0 }
 0x24f   : > { %2963 = vst [vmem:[%s4955_s10 + $0x98] sm:$0xff] %v2931_v44  ;;  %v4075_v8 = vround.rtne.f32 %v2838_v18  ;;  %v2839_v0 = vadd.f32 %v3754_v39, %v4936_v19  ;;  %v2765_v43 = vpop.f32.mrb[31].mxu0 }
 0x250   : > { %2961 = vst [vmem:[%s4955_s10 + $0x88] sm:$0xff] %v2929_v52  ;;  %v4073_v55 = vround.rtne.f32 %v2836_v32  ;;  %v2837_v6 = vadd.f32 %v3755_v10, %v4936_v19 }
 0x251   : > { %v2902_v26 = vmax.f32 %v4075_v8, 0.0  ;;  %v4076_v15 = vround.rtne.f32 %v2839_v0 }
 0x252   : > { %v2900_v60 = vmax.f32 %v4073_v55, 0.0  ;;  %v4074_v9 = vround.rtne.f32 %v2837_v6  ;;  %v3588_v24 = vpop.f32.mrb[24].mxu1 }
 0x253   : > { %v2934_v53 = vmin.f32 %v2902_v26, 255.0  ;;  %v2903_v23 = vmax.f32 %v4076_v15, 0.0  ;;  %v3756_v63 = vadd.f32 %v3724_v12, %v3588_v24  ;;  %v1921_v28 = vpop.f32.mrb[25].mxu1 }
 0x254   : > { %v2932_v30 = vmin.f32 %v2900_v60, 255.0  ;;  %v2901_v25 = vmax.f32 %v4074_v9, 0.0  ;;  %v3757_v5 = vadd.f32 %v2746_v1, %v1921_v28  ;;  %v3589_v7 = vpop.f32.mrb[26].mxu1 }
 0x255   : > { %2966 = vst [vmem:[%s4955_s10 + $0xb0] sm:$0xff] %v2934_v53  ;;  %v2935_v35 = vmin.f32 %v2903_v23, 255.0  ;;  %v2842_v22 = vadd.f32 %v3756_v63, %v4936_v19  ;;  %v3758_v21 = vadd.f32 %v3725_v46, %v3589_v7  ;;  %v1924_v38 = vpop.f32.mrb[27].mxu1 }
 0x256   : > { %2964 = vst [vmem:[%s4955_s10 + $0xa0] sm:$0xff] %v2932_v30  ;;  %v2933_v2 = vmin.f32 %v2901_v25, 255.0  ;;  %v2840_v45 = vadd.f32 %v3757_v5, %v4936_v19  ;;  %v3759_v59 = vadd.f32 %v2749_v27, %v1924_v38 }
 0x257   : > { %2967 = vst [vmem:[%s4955_s10 + $0xb8] sm:$0xff] %v2935_v35  ;;  %v4079_v50 = vround.rtne.f32 %v2842_v22  ;;  %v2843_v42 = vadd.f32 %v3758_v21, %v4936_v19 }
 0x258   : > { %2965 = vst [vmem:[%s4955_s10 + $0xa8] sm:$0xff] %v2933_v2  ;;  %v4077_v12 = vround.rtne.f32 %v2840_v45  ;;  %v2841_v48 = vadd.f32 %v3759_v59, %v4936_v19 }
 0x259   : > { %v2906_v36 = vmax.f32 %v4079_v50, 0.0  ;;  %v4080_v14 = vround.rtne.f32 %v2843_v42 }
 0x25a   : > { %v2904_v1 = vmax.f32 %v4077_v12, 0.0  ;;  %v4078_v4 = vround.rtne.f32 %v2841_v48  ;;  %v3592_v56 = vpop.f32.mrb[28].mxu1 }
 0x25b   : > { %v2938_v46 = vmin.f32 %v2906_v36, 255.0  ;;  %v2907_v47 = vmax.f32 %v4080_v14, 0.0  ;;  %v3760_v62 = vadd.f32 %v3728_v34, %v3592_v56  ;;  %v1937_v27 = vpop.f32.mrb[29].mxu1 }
 0x25c   : > { %v2936_v17 = vmin.f32 %v2904_v1, 255.0  ;;  %v2905_v11 = vmax.f32 %v4078_v4, 0.0  ;;  %v3761_v16 = vadd.f32 %v2762_v13, %v1937_v27  ;;  %v3593_v61 = vpop.f32.mrb[30].mxu1 }
 0x25d   : > { %2970 = vst [vmem:[%s4955_s10 + $0xd0] sm:$0xff] %v2938_v46  ;;  %v2939_v37 = vmin.f32 %v2907_v47, 255.0  ;;  %v2846_v51 = vadd.f32 %v3760_v62, %v4936_v19  ;;  %v3762_v58 = vadd.f32 %v3729_v54, %v3593_v61  ;;  %v1940_v40 = vpop.f32.mrb[31].mxu1 }
 0x25e   : > { %2968 = vst [vmem:[%s4955_s10 + $0xc0] sm:$0xff] %v2936_v17  ;;  %v2937_v57 = vmin.f32 %v2905_v11, 255.0  ;;  %v2844_v41 = vadd.f32 %v3761_v16, %v4936_v19  ;;  %v3763_v49 = vadd.f32 %v2765_v43, %v1940_v40 }
 0x25f   : > { %2971 = vst [vmem:[%s4955_s10 + $0xd8] sm:$0xff] %v2939_v37  ;;  %v4083_v3 = vround.rtne.f32 %v2846_v51  ;;  %v2847_v20 = vadd.f32 %v3762_v58, %v4936_v19 }
 0x260   : > { %2969 = vst [vmem:[%s4955_s10 + $0xc8] sm:$0xff] %v2937_v57  ;;  %v4081_v31 = vround.rtne.f32 %v2844_v41  ;;  %v2845_v33 = vadd.f32 %v3763_v49, %v4936_v19 }
 0x261   : > { %v2910_v34 = vmax.f32 %v4083_v3, 0.0  ;;  %v4084_v44 = vround.rtne.f32 %v2847_v20 }
 0x262   : > { %v2908_v18 = vmax.f32 %v4081_v31, 0.0  ;;  %v4082_v39 = vround.rtne.f32 %v2845_v33 }
 0x263   : > { %v2942_v29 = vmin.f32 %v2910_v34, 255.0  ;;  %v2911_v13 = vmax.f32 %v4084_v44, 0.0 }
 0x264   : > { %v2940_v52 = vmin.f32 %v2908_v18, 255.0  ;;  %v2909_v32 = vmax.f32 %v4082_v39, 0.0 }
 0x265   : > { %2974 = vst [vmem:[%s4955_s10 + $0xf0] sm:$0xff] %v2942_v29  ;;  %v2943_v10 = vmin.f32 %v2911_v13, 255.0 }
 0x266   : > { %2972 = vst [vmem:[%s4955_s10 + $0xe0] sm:$0xff] %v2940_v52  ;;  %v2941_v19 = vmin.f32 %v2909_v32, 255.0 }
 0x267   : > { %2975 = vst [vmem:[%s4955_s10 + $0xf8] sm:$0xff] %v2943_v10 }
 0x268   : > { %2973 = vst [vmem:[%s4955_s10 + $0xe8] sm:$0xff] %v2941_v19 }
 0x269   : > { %4141 = shalt.err (!%p4138_p3)
}
 0x26a   : > { %s4142_s29 = scalar_lea.hbm %s5026_s24, 4096  ;;  %s4146_s5 = scalar_lea.hbm %s5079_s3, 8192 }
 0x26b   : > { %p4143_p4 = scmp.ne.s32.totalorder %s5026_s24, %s4142_s29  ;;  %p4147_p9 = scmp.lt.u32.totalorder %s5026_s24, %s5079_s3 }
 0x26c   : > { %p4148_p10 = scmp.lt.u32.totalorder %s4146_s5, %s4142_s29  ;;  %p4150_p12 = scmp.lt.u32.totalorder %s4142_s29, %s5026_s24 }
 0x26d   : > { %p4144_p7 = pnand %p4143_p4, %p4253_p5 }
 0x26e   : > { %p4149_p11 = por %p4148_p10, %p4147_p9 }
 0x26f   : > { %p4145_p8 = pneg %p4144_p7 }
 0x270   : > { %p4151_p13 = por %p4150_p12, %p4149_p11 }
 0x272   : > { %p4152_p0 = pnand %p4151_p13, %p4145_p8 }
 0x274   : > { %4155 = shalt.err (!%p4152_p0)
}
 0x275   : > { %s4193_s8 = smov 128   ;;  %s4194_s9 = smov 8  }
 0x276   : > { %4085 = dma.vmem_to_hbm [thread:$0]  (%p4253_p5), %s5028_s17, 4096, %s5026_s24, %s5035_s16, %s4193_s8, %s4193_s8, %s4194_s9  }
 0x277 PF: > { %p4091_p1 = scmp.ge.s32.totalorder %s4190_s15, 2  ;;  %s3005_s10 = sand.u32 1, %s4178_s12  }
 0x278   : > { %s3006_s11 = scalar_lea.sflag [#allocation3], %s3005_s10 }
 0x279   : > { %p4088_p2 = pnand %p4091_p1, %p4257_p6 }
 0x27b   : > { %4173 = dma.done.wait (!%p4088_p2), %s3006_s11, 4096  }
 0x27c   : > { %4175 = vsyncadd (!%p4088_p2), %s3006_s11, 4294963200  ;;  %p13_p3 = scmp.ge.s32.totalorder %s4240_s18, 4   ;;  %s5101_s12 = smov %s4182_s13 }
 0x27d   : > { %s5102_s13 = smov %s4186_s14  ;;  %s5103_s14 = smov %s4251_s21 }
 0x27e   : > { %s5104_s15 = smov %s4240_s18  ;;  %15 = sbr.rel (!%p13_p3) target bundleno = 3 (0x3), region = 75 }
 0x285   :  { %3011 = vsyncpa [#allocation3], 1 }
 0x286   :  { %3013 = vsyncpa [#allocation3 + $0x1], 1 }

</bundles_post_ra>
